<compile_context>
chip_gen: v7x
topology: tpu7x:2x2x1
jax: 0.10.0
libtpu: 0.0.40
codegen_flags: <defaults>
</compile_context>

<pallas_src>
import functools

import jax
import jax.numpy as jnp
from jax import lax
from jax.experimental import pallas as pl
from jax.experimental.pallas import tpu as pltpu


# ----------------------------------------------------------------------------
# Fused Pallas kernel: whole autoencoder for one image per grid step
# ----------------------------------------------------------------------------
def _aed_fused_kernel(x_ref, B1_ref, B2_ref, B3_ref, B4_ref,
                      r1_ref, r2_ref, r3_ref, r4_ref, out_ref, *, h_in):
    f32 = jnp.float32

    def conv3x3_s2(x, b_stk_ref, bias_ref, h_i, h_o):
        # x: (h_i, W_i*Cin).  Conv2d(k=3, s=2, p=1):
        #   rows:  R_ky[o, i] = 1 iff i == 2*o + ky - 1   (tap into the zero pad -> zero row)
        #   cols + weights: folded into B[ky]  ((W_i*Cin) x (W_o*Cout))
        r = lax.broadcasted_iota(jnp.int32, (h_o, h_i), 0)
        c = lax.broadcasted_iota(jnp.int32, (h_o, h_i), 1)
        acc = bias_ref[...]                                   # (1, W_o*Cout), broadcasts
        for ky in range(3):
            rsel = jnp.where(c == 2 * r + (ky - 1), f32(1.0), f32(0.0))
            rows = jnp.dot(rsel, x, preferred_element_type=f32)          # (h_o, W_i*Cin)
            acc = acc + jnp.dot(rows, b_stk_ref[ky], preferred_element_type=f32)
        return jnp.maximum(acc, 0.0)                          # ReLU

    def convT3x3_s2(x, b_stk_ref, bias_ref, h_i, sigmoid_out):
        # x: (h_i, W_i*Cin).  ConvTranspose2d(k=3, s=2, p=1, op=1) via subpixel
        # decomposition (no dilated-with-zeros intermediate, no wasted MACs):
        #   even output row 2a   = x[a]   @ B[ky=1]
        #   odd  output row 2a+1 = x[a]   @ B[ky=0]  +  x[a+1] @ B[ky=2]
        # (x[h_i] == 0 is handled by the selection matrix having no matching column.)
        h_o = 2 * h_i
        r = lax.broadcasted_iota(jnp.int32, (h_o, h_i), 0)
        c = lax.broadcasted_iota(jnp.int32, (h_o, h_i), 1)
        u_even = jnp.where(r == 2 * c, f32(1.0), f32(0.0))        # row 2a   <- x[a]
        u_odd0 = jnp.where(r == 2 * c + 1, f32(1.0), f32(0.0))    # row 2a+1 <- x[a]
        u_odd2 = jnp.where(r == 2 * c - 1, f32(1.0), f32(0.0))    # row 2a+1 <- x[a+1]
        acc = bias_ref[...]
        for u, ky in ((u_even, 1), (u_odd0, 0), (u_odd2, 2)):
            rows = jnp.dot(u, x, preferred_element_type=f32)               # (h_o, W_i*Cin)
            acc = acc + jnp.dot(rows, b_stk_ref[ky], preferred_element_type=f32)
        if sigmoid_out:
            return 1.0 / (1.0 + jnp.exp(-acc))                # Sigmoid
        return jnp.maximum(acc, 0.0)                          # ReLU

    h0, h1, h2 = h_in, h_in // 2, h_in // 4
    x = x_ref[...]                                            # (H,   W*3)
    a1 = conv3x3_s2(x, B1_ref, r1_ref, h0, h1)                # (H/2, (W/2)*16)
    a2 = conv3x3_s2(a1, B2_ref, r2_ref, h1, h2)               # (H/4, (W/4)*8)
    a3 = convT3x3_s2(a2, B3_ref, r3_ref, h2, sigmoid_out=False)   # (H/2, (W/2)*16)
    a4 = convT3x3_s2(a3, B4_ref, r4_ref, h1, sigmoid_out=True)    # (H,   W*3)
    out_ref[...] = a4


# ----------------------------------------------------------------------------
# One-time weight preprocessing ("column-fold" matrices, pre-tiled bias rows)
# ----------------------------------------------------------------------------
def _enc_col_weights(w, w_in):
    """Conv2d weight (Cout, Cin, 3, 3) -> stacked (3, W_in*Cin, W_out*Cout)."""
    cout, cin = int(w.shape[0]), int(w.shape[1])
    w_out = w_in // 2
    wi = jnp.arange(w_in)
    wo = jnp.arange(w_out)
    stk = []
    for ky in range(3):
        acc = jnp.zeros((w_in, cin, w_out, cout), jnp.float32)
        for kx in range(3):
            # output col wo reads input data col 2*wo + kx - 1 (pad=1 -> out of range = 0)
            sel = (wi[:, None] == 2 * wo[None, :] + (kx - 1)).astype(jnp.float32)
            acc = acc + sel[:, None, :, None] * w[:, :, ky, kx].T[None, :, None, :]
        stk.append(acc.reshape(w_in * cin, w_out * cout))
    return jnp.stack(stk)


def _dec_col_weights(wt, w_in):
    """ConvTranspose2d weight (Cin, Cout, 3, 3) -> stacked (3, W_in*Cin, 2*W_in*Cout)."""
    cin, cout = int(wt.shape[0]), int(wt.shape[1])
    w_out = 2 * w_in
    wf = jnp.flip(wt, axis=(2, 3)).transpose(2, 3, 0, 1)      # (ky, kx, Cin, Cout)
    wi = jnp.arange(w_in)
    wo = jnp.arange(w_out)
    stk = []
    for ky in range(3):
        acc = jnp.zeros((w_in, cin, w_out, cout), jnp.float32)
        for kx in range(3):
            # dilated+padded col (1 + 2*b) feeds output col wo via tap kx
            sel = ((1 + 2 * wi[:, None]) == (wo[None, :] + kx)).astype(jnp.float32)
            acc = acc + sel[:, None, :, None] * wf[ky, kx][None, :, None, :]
        stk.append(acc.reshape(w_in * cin, w_out * cout))
    return jnp.stack(stk)


def prepare_params(params, w_in=16):
    w1, w2 = w_in // 2, w_in // 4
    return {
        "B1": _enc_col_weights(params["w1"], w_in),   # (3,  48, 128) for W=16
        "B2": _enc_col_weights(params["w2"], w1),     # (3, 128,  32)
        "B3": _dec_col_weights(params["w3"], w2),     # (3,  32, 128)
        "B4": _dec_col_weights(params["w4"], w1),     # (3, 128,  48)
        "r1": jnp.tile(params["b1"].astype(jnp.float32), w1)[None, :],
        "r2": jnp.tile(params["b2"].astype(jnp.float32), w2)[None, :],
        "r3": jnp.tile(params["b3"].astype(jnp.float32), 2 * w2)[None, :],
        "r4": jnp.tile(params["b4"].astype(jnp.float32), 2 * w1)[None, :],
    }


# ----------------------------------------------------------------------------
# Forward pass: one fused pallas_call, gridded over the batch
# ----------------------------------------------------------------------------
def aed_cifar_forward(x_nchw, prep):
    n, c, h, w = x_nchw.shape
    assert c == 3 and h % 4 == 0 and w % 4 == 0, (n, c, h, w)
    x2d = jnp.transpose(x_nchw, (0, 2, 3, 1)).reshape(n, h, w * 3).astype(jnp.float32)

    kernel = functools.partial(_aed_fused_kernel, h_in=h)
    out2d = pl.pallas_call(
        kernel,
        out_shape=jax.ShapeDtypeStruct((n, h, w * 3), jnp.float32),
        grid=(n,),
        in_specs=[
            pl.BlockSpec((None, h, w * 3), lambda i: (i, 0, 0)),
            pl.BlockSpec(prep["B1"].shape, lambda i: (0, 0, 0)),
            pl.BlockSpec(prep["B2"].shape, lambda i: (0, 0, 0)),
            pl.BlockSpec(prep["B3"].shape, lambda i: (0, 0, 0)),
            pl.BlockSpec(prep["B4"].shape, lambda i: (0, 0, 0)),
            pl.BlockSpec(prep["r1"].shape, lambda i: (0, 0)),
            pl.BlockSpec(prep["r2"].shape, lambda i: (0, 0)),
            pl.BlockSpec(prep["r3"].shape, lambda i: (0, 0)),
            pl.BlockSpec(prep["r4"].shape, lambda i: (0, 0)),
        ],
        out_specs=pl.BlockSpec((None, h, w * 3), lambda i: (i, 0, 0)),
        compiler_params=pltpu.CompilerParams(
            dimension_semantics=("parallel",),   # v7x: one image per TensorCore
        ),
    )(x2d, prep["B1"], prep["B2"], prep["B3"], prep["B4"],
      prep["r1"], prep["r2"], prep["r3"], prep["r4"])

    # (N, H, W*3) with (w, c)-minor columns -> NCHW (PyTorch output convention)
    return jnp.transpose(out2d.reshape(n, h, w, 3), (0, 3, 1, 2))


# ----------------------------------------------------------------------------
# Params + pure-lax reference (for self-check)
# ----------------------------------------------------------------------------
def init_params(key):
    ks = jax.random.split(key, 8)

    def u(k, shape, fan_in):
        bound = 1.0 / jnp.sqrt(float(fan_in))
        return jax.random.uniform(k, shape, jnp.float32, -bound, bound)

    return {
        # encoder (Conv2d weight layout: [Cout, Cin, kh, kw])
        "w1": u(ks[0], (16, 3, 3, 3), 3 * 9),   "b1": u(ks[1], (16,), 3 * 9),
        "w2": u(ks[2], (8, 16, 3, 3), 16 * 9),  "b2": u(ks[3], (8,), 16 * 9),
        # decoder (ConvTranspose2d weight layout: [Cin, Cout, kh, kw])
        "w3": u(ks[4], (8, 16, 3, 3), 8 * 9),   "b3": u(ks[5], (16,), 8 * 9),
        "w4": u(ks[6], (16, 3, 3, 3), 16 * 9),  "b4": u(ks[7], (3,), 16 * 9),
    }


def _reference_forward(x_nchw, params):
    dn = ("NHWC", "HWIO", "NHWC")
    hi = jax.lax.Precision.HIGHEST
    x = jnp.transpose(x_nchw, (0, 2, 3, 1))

    def conv(a, w, b):
        rhs = jnp.transpose(w, (2, 3, 1, 0))
        y = lax.conv_general_dilated(a, rhs, (2, 2), [(1, 1), (1, 1)],
                                     dimension_numbers=dn, precision=hi)
        return jax.nn.relu(y + b)

    def convT(a, wt, b, act):
        rhs = jnp.transpose(jnp.flip(wt, (2, 3)), (2, 3, 0, 1))
        y = lax.conv_general_dilated(a, rhs, (1, 1), [(1, 2), (1, 2)],
                                     lhs_dilation=(2, 2),
                                     dimension_numbers=dn, precision=hi)
        y = y + b
        return jax.nn.relu(y) if act == "relu" else jax.nn.sigmoid(y)

    h = conv(x, params["w1"], params["b1"])
    h = conv(h, params["w2"], params["b2"])
    h = convT(h, params["w3"], params["b3"], "relu")
    h = convT(h, params["w4"], params["b4"], "sigmoid")
    return jnp.transpose(h, (0, 3, 1, 2))


if __name__ == "__main__":
    key = jax.random.PRNGKey(0)
    kx, kp = jax.random.split(key)
    params = init_params(kp)

    # small CIFAR-like input: batch=2, channels=3, spatial=16x16
    x = jax.random.uniform(kx, (2, 3, 16, 16), jnp.float32)

    prep = prepare_params(params, w_in=16)   # one-time weight preprocessing
    fwd = jax.jit(aed_cifar_forward)
    y = fwd(x, prep)
    jax.block_until_ready(y)

    assert y.shape == (2, 3, 16, 16), y.shape
    assert bool(jnp.all(jnp.isfinite(y)))
    assert bool(jnp.all((y >= 0.0) & (y <= 1.0)))   # sigmoid output range

    # cross-check against a pure-lax implementation of the same module
    y_ref = _reference_forward(x, params)
    max_err = float(jnp.max(jnp.abs(y - y_ref)))
    assert max_err < 2e-2, f"mismatch vs lax reference: {max_err}"

    print("KERNEL_OK")
</pallas_src>

<mosaic_0001>
module attributes {stable_mosaic.version = 11 : i64} {
  func.func @_aed_fused_kernel(%arg0: i32, %arg1: memref<1x16x48xf32, #tpu.memory_space<vmem>>, %arg2: memref<3x48x128xf32, #tpu.memory_space<vmem>>, %arg3: memref<3x128x32xf32, #tpu.memory_space<vmem>>, %arg4: memref<3x32x128xf32, #tpu.memory_space<vmem>>, %arg5: memref<3x128x48xf32, #tpu.memory_space<vmem>>, %arg6: memref<1x128xf32, #tpu.memory_space<vmem>>, %arg7: memref<1x32xf32, #tpu.memory_space<vmem>>, %arg8: memref<1x128xf32, #tpu.memory_space<vmem>>, %arg9: memref<1x48xf32, #tpu.memory_space<vmem>>, %arg10: memref<1x16x48xf32, #tpu.memory_space<vmem>>) attributes {dimension_semantics = [#tpu.dimension_semantics<parallel>], iteration_bounds = array<i64: 2>, scalar_prefetch = 0 : i64, scratch_operands = 0 : i64, tpu.core_type = #tpu.core_type<tc>, window_params = [{transform_indices = @transform_0, window_bounds = array<i64: 1, 16, 48>}, {pipeline_mode = #tpu.pipeline_mode<synchronous>, transform_indices = @transform_1, window_bounds = array<i64: 3, 48, 128>}, {pipeline_mode = #tpu.pipeline_mode<synchronous>, transform_indices = @transform_2, window_bounds = array<i64: 3, 128, 32>}, {pipeline_mode = #tpu.pipeline_mode<synchronous>, transform_indices = @transform_3, window_bounds = array<i64: 3, 32, 128>}, {pipeline_mode = #tpu.pipeline_mode<synchronous>, transform_indices = @transform_4, window_bounds = array<i64: 3, 128, 48>}, {pipeline_mode = #tpu.pipeline_mode<synchronous>, transform_indices = @transform_5, window_bounds = array<i64: 1, 128>}, {pipeline_mode = #tpu.pipeline_mode<synchronous>, transform_indices = @transform_6, window_bounds = array<i64: 1, 32>}, {pipeline_mode = #tpu.pipeline_mode<synchronous>, transform_indices = @transform_7, window_bounds = array<i64: 1, 128>}, {pipeline_mode = #tpu.pipeline_mode<synchronous>, transform_indices = @transform_8, window_bounds = array<i64: 1, 48>}, {transform_indices = @transform_9, window_bounds = array<i64: 1, 16, 48>}]} {
    %c0 = arith.constant 0 : index
    %c0_0 = arith.constant 0 : index
    %c0_1 = arith.constant 0 : index
    %0 = vector.load %arg1[%c0, %c0_0, %c0_1] : memref<1x16x48xf32, #tpu.memory_space<vmem>>, vector<1x16x48xf32>
    %1 = vector.shape_cast %0 : vector<1x16x48xf32> to vector<16x48xf32>
    %2 = tpu.iota {dimensions = array<i32: 0>} : vector<8x16xi32>
    %3 = tpu.iota {dimensions = array<i32: 1>} : vector<8x16xi32>
    %c0_2 = arith.constant 0 : index
    %c0_3 = arith.constant 0 : index
    %4 = vector.load %arg6[%c0_2, %c0_3] : memref<1x128xf32, #tpu.memory_space<vmem>>, vector<1x128xf32>
    %c2_i32 = arith.constant 2 : i32
    %5 = vector.broadcast %c2_i32 : i32 to vector<8x16xi32>
    %6 = arith.muli %5, %2 : vector<8x16xi32>
    %c-1_i32 = arith.constant -1 : i32
    %7 = vector.broadcast %c-1_i32 : i32 to vector<8x16xi32>
    %8 = arith.addi %6, %7 : vector<8x16xi32>
    %9 = arith.cmpi eq, %3, %8 : vector<8x16xi32>
    %cst = arith.constant 1.000000e+00 : f32
    %cst_4 = arith.constant 0.000000e+00 : f32
    %10 = vector.broadcast %cst : f32 to vector<8x16xf32>
    %11 = vector.broadcast %cst_4 : f32 to vector<8x16xf32>
    %12 = arith.select %9, %10, %11 : vector<8x16xi1>, vector<8x16xf32>
    %cst_5 = arith.constant dense<0.000000e+00> : vector<8x48xf32>
    %13 = tpu.matmul %12, %1, %cst_5 {dimension_numbers = #tpu.dot_dimension_numbers<[1], [0], [0], [1], [0, 0, 1, 1], [], []>} : vector<8x16xf32>, vector<16x48xf32>, vector<8x48xf32> -> vector<8x48xf32>
    %c0_6 = arith.constant 0 : index
    %c0_7 = arith.constant 0 : index
    %c0_8 = arith.constant 0 : index
    %14 = vector.load %arg2[%c0_6, %c0_7, %c0_8] : memref<3x48x128xf32, #tpu.memory_space<vmem>>, vector<1x48x128xf32>
    %15 = vector.shape_cast %14 : vector<1x48x128xf32> to vector<48x128xf32>
    %cst_9 = arith.constant dense<0.000000e+00> : vector<8x128xf32>
    %16 = tpu.matmul %13, %15, %cst_9 {dimension_numbers = #tpu.dot_dimension_numbers<[1], [0], [0], [1], [0, 0, 1, 1], [], []>} : vector<8x48xf32>, vector<48x128xf32>, vector<8x128xf32> -> vector<8x128xf32>
    %17 = vector.broadcast %4 : vector<1x128xf32> to vector<8x128xf32>
    %18 = arith.addf %17, %16 : vector<8x128xf32>
    %c2_i32_10 = arith.constant 2 : i32
    %19 = vector.broadcast %c2_i32_10 : i32 to vector<8x16xi32>
    %20 = arith.muli %19, %2 : vector<8x16xi32>
    %c0_i32 = arith.constant 0 : i32
    %21 = vector.broadcast %c0_i32 : i32 to vector<8x16xi32>
    %22 = arith.addi %20, %21 : vector<8x16xi32>
    %23 = arith.cmpi eq, %3, %22 : vector<8x16xi32>
    %cst_11 = arith.constant 1.000000e+00 : f32
    %cst_12 = arith.constant 0.000000e+00 : f32
    %24 = vector.broadcast %cst_11 : f32 to vector<8x16xf32>
    %25 = vector.broadcast %cst_12 : f32 to vector<8x16xf32>
    %26 = arith.select %23, %24, %25 : vector<8x16xi1>, vector<8x16xf32>
    %cst_13 = arith.constant dense<0.000000e+00> : vector<8x48xf32>
    %27 = tpu.matmul %26, %1, %cst_13 {dimension_numbers = #tpu.dot_dimension_numbers<[1], [0], [0], [1], [0, 0, 1, 1], [], []>} : vector<8x16xf32>, vector<16x48xf32>, vector<8x48xf32> -> vector<8x48xf32>
    %c1 = arith.constant 1 : index
    %c0_14 = arith.constant 0 : index
    %c0_15 = arith.constant 0 : index
    %28 = vector.load %arg2[%c1, %c0_14, %c0_15] : memref<3x48x128xf32, #tpu.memory_space<vmem>>, vector<1x48x128xf32>
    %29 = vector.shape_cast %28 : vector<1x48x128xf32> to vector<48x128xf32>
    %cst_16 = arith.constant dense<0.000000e+00> : vector<8x128xf32>
    %30 = tpu.matmul %27, %29, %cst_16 {dimension_numbers = #tpu.dot_dimension_numbers<[1], [0], [0], [1], [0, 0, 1, 1], [], []>} : vector<8x48xf32>, vector<48x128xf32>, vector<8x128xf32> -> vector<8x128xf32>
    %31 = arith.addf %18, %30 : vector<8x128xf32>
    %c2_i32_17 = arith.constant 2 : i32
    %32 = vector.broadcast %c2_i32_17 : i32 to vector<8x16xi32>
    %33 = arith.muli %32, %2 : vector<8x16xi32>
    %c1_i32 = arith.constant 1 : i32
    %34 = vector.broadcast %c1_i32 : i32 to vector<8x16xi32>
    %35 = arith.addi %33, %34 : vector<8x16xi32>
    %36 = arith.cmpi eq, %3, %35 : vector<8x16xi32>
    %cst_18 = arith.constant 1.000000e+00 : f32
    %cst_19 = arith.constant 0.000000e+00 : f32
    %37 = vector.broadcast %cst_18 : f32 to vector<8x16xf32>
    %38 = vector.broadcast %cst_19 : f32 to vector<8x16xf32>
    %39 = arith.select %36, %37, %38 : vector<8x16xi1>, vector<8x16xf32>
    %cst_20 = arith.constant dense<0.000000e+00> : vector<8x48xf32>
    %40 = tpu.matmul %39, %1, %cst_20 {dimension_numbers = #tpu.dot_dimension_numbers<[1], [0], [0], [1], [0, 0, 1, 1], [], []>} : vector<8x16xf32>, vector<16x48xf32>, vector<8x48xf32> -> vector<8x48xf32>
    %c2 = arith.constant 2 : index
    %c0_21 = arith.constant 0 : index
    %c0_22 = arith.constant 0 : index
    %41 = vector.load %arg2[%c2, %c0_21, %c0_22] : memref<3x48x128xf32, #tpu.memory_space<vmem>>, vector<1x48x128xf32>
    %42 = vector.shape_cast %41 : vector<1x48x128xf32> to vector<48x128xf32>
    %cst_23 = arith.constant dense<0.000000e+00> : vector<8x128xf32>
    %43 = tpu.matmul %40, %42, %cst_23 {dimension_numbers = #tpu.dot_dimension_numbers<[1], [0], [0], [1], [0, 0, 1, 1], [], []>} : vector<8x48xf32>, vector<48x128xf32>, vector<8x128xf32> -> vector<8x128xf32>
    %44 = arith.addf %31, %43 : vector<8x128xf32>
    %cst_24 = arith.constant 0.000000e+00 : f32
    %45 = vector.broadcast %cst_24 : f32 to vector<8x128xf32>
    %46 = arith.maximumf %44, %45 : vector<8x128xf32>
    %47 = tpu.iota {dimensions = array<i32: 0>} : vector<4x8xi32>
    %48 = tpu.iota {dimensions = array<i32: 1>} : vector<4x8xi32>
    %c0_25 = arith.constant 0 : index
    %c0_26 = arith.constant 0 : index
    %49 = vector.load %arg7[%c0_25, %c0_26] : memref<1x32xf32, #tpu.memory_space<vmem>>, vector<1x32xf32>
    %c2_i32_27 = arith.constant 2 : i32
    %50 = vector.broadcast %c2_i32_27 : i32 to vector<4x8xi32>
    %51 = arith.muli %50, %47 : vector<4x8xi32>
    %c-1_i32_28 = arith.constant -1 : i32
    %52 = vector.broadcast %c-1_i32_28 : i32 to vector<4x8xi32>
    %53 = arith.addi %51, %52 : vector<4x8xi32>
    %54 = arith.cmpi eq, %48, %53 : vector<4x8xi32>
    %cst_29 = arith.constant 1.000000e+00 : f32
    %cst_30 = arith.constant 0.000000e+00 : f32
    %55 = vector.broadcast %cst_29 : f32 to vector<4x8xf32>
    %56 = vector.broadcast %cst_30 : f32 to vector<4x8xf32>
    %57 = arith.select %54, %55, %56 : vector<4x8xi1>, vector<4x8xf32>
    %cst_31 = arith.constant dense<0.000000e+00> : vector<4x128xf32>
    %58 = tpu.matmul %57, %46, %cst_31 {dimension_numbers = #tpu.dot_dimension_numbers<[1], [0], [0], [1], [0, 0, 1, 1], [], []>} : vector<4x8xf32>, vector<8x128xf32>, vector<4x128xf32> -> vector<4x128xf32>
    %c0_32 = arith.constant 0 : index
    %c0_33 = arith.constant 0 : index
    %c0_34 = arith.constant 0 : index
    %59 = vector.load %arg3[%c0_32, %c0_33, %c0_34] : memref<3x128x32xf32, #tpu.memory_space<vmem>>, vector<1x128x32xf32>
    %60 = vector.shape_cast %59 : vector<1x128x32xf32> to vector<128x32xf32>
    %cst_35 = arith.constant dense<0.000000e+00> : vector<4x32xf32>
    %61 = tpu.matmul %58, %60, %cst_35 {dimension_numbers = #tpu.dot_dimension_numbers<[1], [0], [0], [1], [0, 0, 1, 1], [], []>} : vector<4x128xf32>, vector<128x32xf32>, vector<4x32xf32> -> vector<4x32xf32>
    %62 = vector.broadcast %49 : vector<1x32xf32> to vector<4x32xf32>
    %63 = arith.addf %62, %61 : vector<4x32xf32>
    %c2_i32_36 = arith.constant 2 : i32
    %64 = vector.broadcast %c2_i32_36 : i32 to vector<4x8xi32>
    %65 = arith.muli %64, %47 : vector<4x8xi32>
    %c0_i32_37 = arith.constant 0 : i32
    %66 = vector.broadcast %c0_i32_37 : i32 to vector<4x8xi32>
    %67 = arith.addi %65, %66 : vector<4x8xi32>
    %68 = arith.cmpi eq, %48, %67 : vector<4x8xi32>
    %cst_38 = arith.constant 1.000000e+00 : f32
    %cst_39 = arith.constant 0.000000e+00 : f32
    %69 = vector.broadcast %cst_38 : f32 to vector<4x8xf32>
    %70 = vector.broadcast %cst_39 : f32 to vector<4x8xf32>
    %71 = arith.select %68, %69, %70 : vector<4x8xi1>, vector<4x8xf32>
    %cst_40 = arith.constant dense<0.000000e+00> : vector<4x128xf32>
    %72 = tpu.matmul %71, %46, %cst_40 {dimension_numbers = #tpu.dot_dimension_numbers<[1], [0], [0], [1], [0, 0, 1, 1], [], []>} : vector<4x8xf32>, vector<8x128xf32>, vector<4x128xf32> -> vector<4x128xf32>
    %c1_41 = arith.constant 1 : index
    %c0_42 = arith.constant 0 : index
    %c0_43 = arith.constant 0 : index
    %73 = vector.load %arg3[%c1_41, %c0_42, %c0_43] : memref<3x128x32xf32, #tpu.memory_space<vmem>>, vector<1x128x32xf32>
    %74 = vector.shape_cast %73 : vector<1x128x32xf32> to vector<128x32xf32>
    %cst_44 = arith.constant dense<0.000000e+00> : vector<4x32xf32>
    %75 = tpu.matmul %72, %74, %cst_44 {dimension_numbers = #tpu.dot_dimension_numbers<[1], [0], [0], [1], [0, 0, 1, 1], [], []>} : vector<4x128xf32>, vector<128x32xf32>, vector<4x32xf32> -> vector<4x32xf32>
    %76 = arith.addf %63, %75 : vector<4x32xf32>
    %c2_i32_45 = arith.constant 2 : i32
    %77 = vector.broadcast %c2_i32_45 : i32 to vector<4x8xi32>
    %78 = arith.muli %77, %47 : vector<4x8xi32>
    %c1_i32_46 = arith.constant 1 : i32
    %79 = vector.broadcast %c1_i32_46 : i32 to vector<4x8xi32>
    %80 = arith.addi %78, %79 : vector<4x8xi32>
    %81 = arith.cmpi eq, %48, %80 : vector<4x8xi32>
    %cst_47 = arith.constant 1.000000e+00 : f32
    %cst_48 = arith.constant 0.000000e+00 : f32
    %82 = vector.broadcast %cst_47 : f32 to vector<4x8xf32>
    %83 = vector.broadcast %cst_48 : f32 to vector<4x8xf32>
    %84 = arith.select %81, %82, %83 : vector<4x8xi1>, vector<4x8xf32>
    %cst_49 = arith.constant dense<0.000000e+00> : vector<4x128xf32>
    %85 = tpu.matmul %84, %46, %cst_49 {dimension_numbers = #tpu.dot_dimension_numbers<[1], [0], [0], [1], [0, 0, 1, 1], [], []>} : vector<4x8xf32>, vector<8x128xf32>, vector<4x128xf32> -> vector<4x128xf32>
    %c2_50 = arith.constant 2 : index
    %c0_51 = arith.constant 0 : index
    %c0_52 = arith.constant 0 : index
    %86 = vector.load %arg3[%c2_50, %c0_51, %c0_52] : memref<3x128x32xf32, #tpu.memory_space<vmem>>, vector<1x128x32xf32>
    %87 = vector.shape_cast %86 : vector<1x128x32xf32> to vector<128x32xf32>
    %cst_53 = arith.constant dense<0.000000e+00> : vector<4x32xf32>
    %88 = tpu.matmul %85, %87, %cst_53 {dimension_numbers = #tpu.dot_dimension_numbers<[1], [0], [0], [1], [0, 0, 1, 1], [], []>} : vector<4x128xf32>, vector<128x32xf32>, vector<4x32xf32> -> vector<4x32xf32>
    %89 = arith.addf %76, %88 : vector<4x32xf32>
    %cst_54 = arith.constant 0.000000e+00 : f32
    %90 = vector.broadcast %cst_54 : f32 to vector<4x32xf32>
    %91 = arith.maximumf %89, %90 : vector<4x32xf32>
    %92 = tpu.iota {dimensions = array<i32: 0>} : vector<8x4xi32>
    %93 = tpu.iota {dimensions = array<i32: 1>} : vector<8x4xi32>
    %c2_i32_55 = arith.constant 2 : i32
    %94 = vector.broadcast %c2_i32_55 : i32 to vector<8x4xi32>
    %95 = arith.muli %94, %93 : vector<8x4xi32>
    %96 = arith.cmpi eq, %92, %95 : vector<8x4xi32>
    %cst_56 = arith.constant 1.000000e+00 : f32
    %cst_57 = arith.constant 0.000000e+00 : f32
    %97 = vector.broadcast %cst_56 : f32 to vector<8x4xf32>
    %98 = vector.broadcast %cst_57 : f32 to vector<8x4xf32>
    %99 = arith.select %96, %97, %98 : vector<8x4xi1>, vector<8x4xf32>
    %c2_i32_58 = arith.constant 2 : i32
    %100 = vector.broadcast %c2_i32_58 : i32 to vector<8x4xi32>
    %101 = arith.muli %100, %93 : vector<8x4xi32>
    %c1_i32_59 = arith.constant 1 : i32
    %102 = vector.broadcast %c1_i32_59 : i32 to vector<8x4xi32>
    %103 = arith.addi %101, %102 : vector<8x4xi32>
    %104 = arith.cmpi eq, %92, %103 : vector<8x4xi32>
    %cst_60 = arith.constant 1.000000e+00 : f32
    %cst_61 = arith.constant 0.000000e+00 : f32
    %105 = vector.broadcast %cst_60 : f32 to vector<8x4xf32>
    %106 = vector.broadcast %cst_61 : f32 to vector<8x4xf32>
    %107 = arith.select %104, %105, %106 : vector<8x4xi1>, vector<8x4xf32>
    %c2_i32_62 = arith.constant 2 : i32
    %108 = vector.broadcast %c2_i32_62 : i32 to vector<8x4xi32>
    %109 = arith.muli %108, %93 : vector<8x4xi32>
    %c1_i32_63 = arith.constant 1 : i32
    %110 = vector.broadcast %c1_i32_63 : i32 to vector<8x4xi32>
    %111 = arith.subi %109, %110 : vector<8x4xi32>
    %112 = arith.cmpi eq, %92, %111 : vector<8x4xi32>
    %cst_64 = arith.constant 1.000000e+00 : f32
    %cst_65 = arith.constant 0.000000e+00 : f32
    %113 = vector.broadcast %cst_64 : f32 to vector<8x4xf32>
    %114 = vector.broadcast %cst_65 : f32 to vector<8x4xf32>
    %115 = arith.select %112, %113, %114 : vector<8x4xi1>, vector<8x4xf32>
    %c0_66 = arith.constant 0 : index
    %c0_67 = arith.constant 0 : index
    %116 = vector.load %arg8[%c0_66, %c0_67] : memref<1x128xf32, #tpu.memory_space<vmem>>, vector<1x128xf32>
    %cst_68 = arith.constant dense<0.000000e+00> : vector<8x32xf32>
    %117 = tpu.matmul %99, %91, %cst_68 {dimension_numbers = #tpu.dot_dimension_numbers<[1], [0], [0], [1], [0, 0, 1, 1], [], []>} : vector<8x4xf32>, vector<4x32xf32>, vector<8x32xf32> -> vector<8x32xf32>
    %c1_69 = arith.constant 1 : index
    %c0_70 = arith.constant 0 : index
    %c0_71 = arith.constant 0 : index
    %118 = vector.load %arg4[%c1_69, %c0_70, %c0_71] : memref<3x32x128xf32, #tpu.memory_space<vmem>>, vector<1x32x128xf32>
    %119 = vector.shape_cast %118 : vector<1x32x128xf32> to vector<32x128xf32>
    %cst_72 = arith.constant dense<0.000000e+00> : vector<8x128xf32>
    %120 = tpu.matmul %117, %119, %cst_72 {dimension_numbers = #tpu.dot_dimension_numbers<[1], [0], [0], [1], [0, 0, 1, 1], [], []>} : vector<8x32xf32>, vector<32x128xf32>, vector<8x128xf32> -> vector<8x128xf32>
    %121 = vector.broadcast %116 : vector<1x128xf32> to vector<8x128xf32>
    %122 = arith.addf %121, %120 : vector<8x128xf32>
    %cst_73 = arith.constant dense<0.000000e+00> : vector<8x32xf32>
    %123 = tpu.matmul %107, %91, %cst_73 {dimension_numbers = #tpu.dot_dimension_numbers<[1], [0], [0], [1], [0, 0, 1, 1], [], []>} : vector<8x4xf32>, vector<4x32xf32>, vector<8x32xf32> -> vector<8x32xf32>
    %c0_74 = arith.constant 0 : index
    %c0_75 = arith.constant 0 : index
    %c0_76 = arith.constant 0 : index
    %124 = vector.load %arg4[%c0_74, %c0_75, %c0_76] : memref<3x32x128xf32, #tpu.memory_space<vmem>>, vector<1x32x128xf32>
    %125 = vector.shape_cast %124 : vector<1x32x128xf32> to vector<32x128xf32>
    %cst_77 = arith.constant dense<0.000000e+00> : vector<8x128xf32>
    %126 = tpu.matmul %123, %125, %cst_77 {dimension_numbers = #tpu.dot_dimension_numbers<[1], [0], [0], [1], [0, 0, 1, 1], [], []>} : vector<8x32xf32>, vector<32x128xf32>, vector<8x128xf32> -> vector<8x128xf32>
    %127 = arith.addf %122, %126 : vector<8x128xf32>
    %cst_78 = arith.constant dense<0.000000e+00> : vector<8x32xf32>
    %128 = tpu.matmul %115, %91, %cst_78 {dimension_numbers = #tpu.dot_dimension_numbers<[1], [0], [0], [1], [0, 0, 1, 1], [], []>} : vector<8x4xf32>, vector<4x32xf32>, vector<8x32xf32> -> vector<8x32xf32>
    %c2_79 = arith.constant 2 : index
    %c0_80 = arith.constant 0 : index
    %c0_81 = arith.constant 0 : index
    %129 = vector.load %arg4[%c2_79, %c0_80, %c0_81] : memref<3x32x128xf32, #tpu.memory_space<vmem>>, vector<1x32x128xf32>
    %130 = vector.shape_cast %129 : vector<1x32x128xf32> to vector<32x128xf32>
    %cst_82 = arith.constant dense<0.000000e+00> : vector<8x128xf32>
    %131 = tpu.matmul %128, %130, %cst_82 {dimension_numbers = #tpu.dot_dimension_numbers<[1], [0], [0], [1], [0, 0, 1, 1], [], []>} : vector<8x32xf32>, vector<32x128xf32>, vector<8x128xf32> -> vector<8x128xf32>
    %132 = arith.addf %127, %131 : vector<8x128xf32>
    %cst_83 = arith.constant 0.000000e+00 : f32
    %133 = vector.broadcast %cst_83 : f32 to vector<8x128xf32>
    %134 = arith.maximumf %132, %133 : vector<8x128xf32>
    %135 = tpu.iota {dimensions = array<i32: 0>} : vector<16x8xi32>
    %136 = tpu.iota {dimensions = array<i32: 1>} : vector<16x8xi32>
    %c2_i32_84 = arith.constant 2 : i32
    %137 = vector.broadcast %c2_i32_84 : i32 to vector<16x8xi32>
    %138 = arith.muli %137, %136 : vector<16x8xi32>
    %139 = arith.cmpi eq, %135, %138 : vector<16x8xi32>
    %cst_85 = arith.constant 1.000000e+00 : f32
    %cst_86 = arith.constant 0.000000e+00 : f32
    %140 = vector.broadcast %cst_85 : f32 to vector<16x8xf32>
    %141 = vector.broadcast %cst_86 : f32 to vector<16x8xf32>
    %142 = arith.select %139, %140, %141 : vector<16x8xi1>, vector<16x8xf32>
    %c2_i32_87 = arith.constant 2 : i32
    %143 = vector.broadcast %c2_i32_87 : i32 to vector<16x8xi32>
    %144 = arith.muli %143, %136 : vector<16x8xi32>
    %c1_i32_88 = arith.constant 1 : i32
    %145 = vector.broadcast %c1_i32_88 : i32 to vector<16x8xi32>
    %146 = arith.addi %144, %145 : vector<16x8xi32>
    %147 = arith.cmpi eq, %135, %146 : vector<16x8xi32>
    %cst_89 = arith.constant 1.000000e+00 : f32
    %cst_90 = arith.constant 0.000000e+00 : f32
    %148 = vector.broadcast %cst_89 : f32 to vector<16x8xf32>
    %149 = vector.broadcast %cst_90 : f32 to vector<16x8xf32>
    %150 = arith.select %147, %148, %149 : vector<16x8xi1>, vector<16x8xf32>
    %c2_i32_91 = arith.constant 2 : i32
    %151 = vector.broadcast %c2_i32_91 : i32 to vector<16x8xi32>
    %152 = arith.muli %151, %136 : vector<16x8xi32>
    %c1_i32_92 = arith.constant 1 : i32
    %153 = vector.broadcast %c1_i32_92 : i32 to vector<16x8xi32>
    %154 = arith.subi %152, %153 : vector<16x8xi32>
    %155 = arith.cmpi eq, %135, %154 : vector<16x8xi32>
    %cst_93 = arith.constant 1.000000e+00 : f32
    %cst_94 = arith.constant 0.000000e+00 : f32
    %156 = vector.broadcast %cst_93 : f32 to vector<16x8xf32>
    %157 = vector.broadcast %cst_94 : f32 to vector<16x8xf32>
    %158 = arith.select %155, %156, %157 : vector<16x8xi1>, vector<16x8xf32>
    %c0_95 = arith.constant 0 : index
    %c0_96 = arith.constant 0 : index
    %159 = vector.load %arg9[%c0_95, %c0_96] : memref<1x48xf32, #tpu.memory_space<vmem>>, vector<1x48xf32>
    %cst_97 = arith.constant dense<0.000000e+00> : vector<16x128xf32>
    %160 = tpu.matmul %142, %134, %cst_97 {dimension_numbers = #tpu.dot_dimension_numbers<[1], [0], [0], [1], [0, 0, 1, 1], [], []>} : vector<16x8xf32>, vector<8x128xf32>, vector<16x128xf32> -> vector<16x128xf32>
    %c1_98 = arith.constant 1 : index
    %c0_99 = arith.constant 0 : index
    %c0_100 = arith.constant 0 : index
    %161 = vector.load %arg5[%c1_98, %c0_99, %c0_100] : memref<3x128x48xf32, #tpu.memory_space<vmem>>, vector<1x128x48xf32>
    %162 = vector.shape_cast %161 : vector<1x128x48xf32> to vector<128x48xf32>
    %cst_101 = arith.constant dense<0.000000e+00> : vector<16x48xf32>
    %163 = tpu.matmul %160, %162, %cst_101 {dimension_numbers = #tpu.dot_dimension_numbers<[1], [0], [0], [1], [0, 0, 1, 1], [], []>} : vector<16x128xf32>, vector<128x48xf32>, vector<16x48xf32> -> vector<16x48xf32>
    %164 = vector.broadcast %159 : vector<1x48xf32> to vector<16x48xf32>
    %165 = arith.addf %164, %163 : vector<16x48xf32>
    %cst_102 = arith.constant dense<0.000000e+00> : vector<16x128xf32>
    %166 = tpu.matmul %150, %134, %cst_102 {dimension_numbers = #tpu.dot_dimension_numbers<[1], [0], [0], [1], [0, 0, 1, 1], [], []>} : vector<16x8xf32>, vector<8x128xf32>, vector<16x128xf32> -> vector<16x128xf32>
    %c0_103 = arith.constant 0 : index
    %c0_104 = arith.constant 0 : index
    %c0_105 = arith.constant 0 : index
    %167 = vector.load %arg5[%c0_103, %c0_104, %c0_105] : memref<3x128x48xf32, #tpu.memory_space<vmem>>, vector<1x128x48xf32>
    %168 = vector.shape_cast %167 : vector<1x128x48xf32> to vector<128x48xf32>
    %cst_106 = arith.constant dense<0.000000e+00> : vector<16x48xf32>
    %169 = tpu.matmul %166, %168, %cst_106 {dimension_numbers = #tpu.dot_dimension_numbers<[1], [0], [0], [1], [0, 0, 1, 1], [], []>} : vector<16x128xf32>, vector<128x48xf32>, vector<16x48xf32> -> vector<16x48xf32>
    %170 = arith.addf %165, %169 : vector<16x48xf32>
    %cst_107 = arith.constant dense<0.000000e+00> : vector<16x128xf32>
    %171 = tpu.matmul %158, %134, %cst_107 {dimension_numbers = #tpu.dot_dimension_numbers<[1], [0], [0], [1], [0, 0, 1, 1], [], []>} : vector<16x8xf32>, vector<8x128xf32>, vector<16x128xf32> -> vector<16x128xf32>
    %c2_108 = arith.constant 2 : index
    %c0_109 = arith.constant 0 : index
    %c0_110 = arith.constant 0 : index
    %172 = vector.load %arg5[%c2_108, %c0_109, %c0_110] : memref<3x128x48xf32, #tpu.memory_space<vmem>>, vector<1x128x48xf32>
    %173 = vector.shape_cast %172 : vector<1x128x48xf32> to vector<128x48xf32>
    %cst_111 = arith.constant dense<0.000000e+00> : vector<16x48xf32>
    %174 = tpu.matmul %171, %173, %cst_111 {dimension_numbers = #tpu.dot_dimension_numbers<[1], [0], [0], [1], [0, 0, 1, 1], [], []>} : vector<16x128xf32>, vector<128x48xf32>, vector<16x48xf32> -> vector<16x48xf32>
    %175 = arith.addf %170, %174 : vector<16x48xf32>
    %cst_112 = arith.constant 0.000000e+00 : f32
    %176 = vector.broadcast %cst_112 : f32 to vector<16x48xf32>
    %177 = arith.subf %176, %175 : vector<16x48xf32>
    %178 = math.exp %177 : vector<16x48xf32>
    %cst_113 = arith.constant 1.000000e+00 : f32
    %179 = vector.broadcast %cst_113 : f32 to vector<16x48xf32>
    %180 = arith.addf %179, %178 : vector<16x48xf32>
    %cst_114 = arith.constant 1.000000e+00 : f32
    %181 = vector.broadcast %cst_114 : f32 to vector<16x48xf32>
    %182 = arith.divf %181, %180 : vector<16x48xf32>
    %c0_115 = arith.constant 0 : index
    %c0_116 = arith.constant 0 : index
    %c0_117 = arith.constant 0 : index
    %183 = vector.load %arg10[%c0_115, %c0_116, %c0_117] : memref<1x16x48xf32, #tpu.memory_space<vmem>>, vector<1x16x48xf32>
    %184 = vector.shape_cast %183 : vector<1x16x48xf32> to vector<16x48xf32>
    %185 = vector.shape_cast %182 : vector<16x48xf32> to vector<1x16x48xf32>
    tpu.vector_store %arg10[%c0_115, %c0_116, %c0_117], %185 {strides = array<i32>} : memref<1x16x48xf32, #tpu.memory_space<vmem>>, vector<1x16x48xf32>,
    return
  }
  func.func @transform_0(%arg0: i32) -> (i32, i32, i32) {
    %c0_i32 = arith.constant 0 : i32
    %c0_i32_0 = arith.constant 0 : i32
    %c0_i32_1 = arith.constant 0 : i32
    return %arg0, %c0_i32, %c0_i32_0 : i32, i32, i32
  }
  func.func @transform_1(%arg0: i32) -> (i32, i32, i32) {
    %c0_i32 = arith.constant 0 : i32
    %c0_i32_0 = arith.constant 0 : i32
    %c0_i32_1 = arith.constant 0 : i32
    %c0_i32_2 = arith.constant 0 : i32
    return %c0_i32, %c0_i32_0, %c0_i32_1 : i32, i32, i32
  }
  func.func @transform_2(%arg0: i32) -> (i32, i32, i32) {
    %c0_i32 = arith.constant 0 : i32
    %c0_i32_0 = arith.constant 0 : i32
    %c0_i32_1 = arith.constant 0 : i32
    %c0_i32_2 = arith.constant 0 : i32
    return %c0_i32, %c0_i32_0, %c0_i32_1 : i32, i32, i32
  }
  func.func @transform_3(%arg0: i32) -> (i32, i32, i32) {
    %c0_i32 = arith.constant 0 : i32
    %c0_i32_0 = arith.constant 0 : i32
    %c0_i32_1 = arith.constant 0 : i32
    %c0_i32_2 = arith.constant 0 : i32
    return %c0_i32, %c0_i32_0, %c0_i32_1 : i32, i32, i32
  }
  func.func @transform_4(%arg0: i32) -> (i32, i32, i32) {
    %c0_i32 = arith.constant 0 : i32
    %c0_i32_0 = arith.constant 0 : i32
    %c0_i32_1 = arith.constant 0 : i32
    %c0_i32_2 = arith.constant 0 : i32
    return %c0_i32, %c0_i32_0, %c0_i32_1 : i32, i32, i32
  }
  func.func @transform_5(%arg0: i32) -> (i32, i32) {
    %c0_i32 = arith.constant 0 : i32
    %c0_i32_0 = arith.constant 0 : i32
    %c0_i32_1 = arith.constant 0 : i32
    return %c0_i32, %c0_i32_0 : i32, i32
  }
  func.func @transform_6(%arg0: i32) -> (i32, i32) {
    %c0_i32 = arith.constant 0 : i32
    %c0_i32_0 = arith.constant 0 : i32
    %c0_i32_1 = arith.constant 0 : i32
    return %c0_i32, %c0_i32_0 : i32, i32
  }
  func.func @transform_7(%arg0: i32) -> (i32, i32) {
    %c0_i32 = arith.constant 0 : i32
    %c0_i32_0 = arith.constant 0 : i32
    %c0_i32_1 = arith.constant 0 : i32
    return %c0_i32, %c0_i32_0 : i32, i32
  }
  func.func @transform_8(%arg0: i32) -> (i32, i32) {
    %c0_i32 = arith.constant 0 : i32
    %c0_i32_0 = arith.constant 0 : i32
    %c0_i32_1 = arith.constant 0 : i32
    return %c0_i32, %c0_i32_0 : i32, i32
  }
  func.func @transform_9(%arg0: i32) -> (i32, i32, i32) {
    %c0_i32 = arith.constant 0 : i32
    %c0_i32_0 = arith.constant 0 : i32
    %c0_i32_1 = arith.constant 0 : i32
    return %arg0, %c0_i32, %c0_i32_0 : i32, i32, i32
  }
}

</mosaic_0001>

<bundles_post_ra>
// kernel: aed_cifar_forward.1
= control target key start
LH: loop header
LB: loop body
LE: loop exit
PB: predicated region body
PF: predicated region fallthrough
CT: control target
= control target key end

     0   :  { %s3363_s30 = smov 0   ;;  %s3950_s0 = inlined_call_operand.vmem [shape: f32[2,16,48], index: 0, kind: input, shape index: {}]   ;;  %s3951_s1 = inlined_call_operand.vmem [shape: f32[3,48,128], index: 1, kind: input, shape index: {}]   ;;  %s3952_s2 = inlined_call_operand.vmem [shape: f32[3,128,32], index: 2, kind: input, shape index: {}]   ;;  %s3953_s3 = inlined_call_operand.vmem [shape: f32[3,32,128], index: 3, kind: input, shape index: {}]   ;;  %s3954_s4 = inlined_call_operand.vmem [shape: f32[3,128,48], index: 4, kind: input, shape index: {}]   ;;  %s3955_s5 = inlined_call_operand.vmem [shape: f32[1,128], index: 5, kind: input, shape index: {}]   ;;  %s3956_s6 = inlined_call_operand.vmem [shape: f32[1,32], index: 6, kind: input, shape index: {}]   ;;  %s3957_s7 = inlined_call_operand.vmem [shape: f32[1,128], index: 7, kind: input, shape index: {}]   ;;  %s3958_s8 = inlined_call_operand.vmem [shape: f32[1,48], index: 8, kind: input, shape index: {}]   ;;  %s3959_s9 = inlined_call_operand.vmem [shape: f32[2,16,48], index: 9, kind: output, shape index: {}]  }
   0x1 LB: > { %s2389_s10 = sadd.s32 4294967295, %s3308_s30   ;;  %p2393_p0 = scmp.ge.s32.totalorder %s3308_s30, 1  ;;  %s3308_s30 = sphi %s3363_s30, %s19_s30  }
   0x2   : > { %p287_p1 = scmp.lt.s32.totalorder %s3308_s30, 3 }
   0x4   : > { %p288_p2 = pnand %p2393_p0, %p287_p1 }
   0x5   : > { %p323_p3 = scmp.lt.s32.totalorder (!%p288_p2), %s2389_s10, 1  ;;  %v335_v0 = vlaneseq (!%p288_p2)  ;;  %v418_v1 = vld [vmem:[%s3951_s1] sm:$0xff] (!%p288_p2)  ;;  %v419_v2 = vld [vmem:[%s3951_s1 + $0x8] sm:$0xff] (!%p288_p2)  ;;  %v3310_v3 = vmov (!%p288_p2), 0.0|0.0   ;;  %vm3311_vm0 = vmmov (!%p288_p2), 0   ;;  %v3312_v4 = vmov (!%p288_p2), 0.0  }
   0x6   : > { %291 = sbr.rel (%p288_p2) target bundleno = 2538 (0x9ea), region = 56  ;;  %3040 = vmatprep.subr.bf16.mxu0 (!%p288_p2), %v3310_v3  ;;  %2690 = vmatprep.mubr.msk.f32.mxu0 (!%p288_p2), %vm3311_vm0, %v3312_v4  ;;  %v3044_v5 = vpack.c.bf16 (!%p288_p2), %v419_v2, %v418_v1  ;;  %v420_v6 = vld [vmem:[%s3951_s1 + $0x10] sm:$0xff] (!%p288_p2)  ;;  %v421_v7 = vld [vmem:[%s3951_s1 + $0x18] sm:$0xff] (!%p288_p2)  ;;  %v422_v12 = vld [vmem:[%s3951_s1 + $0x20] sm:$0xff] (!%p288_p2)  ;;  %vm344_vm2 = vcmask (!%p288_p2), 130048   ;;  %vm424_vm5 = vcmask (!%p288_p2), 392192  }
   0x7   : > { %v3388_v8 = vshrl.u32 (!%p288_p2), %v335_v0, 7  ;;  %3043 = vmatprep.subr.bf16.mxu1 (!%p288_p2), %v3310_v3  ;;  %2705 = vmatprep.mubr.msk.f32.mxu1 (!%p288_p2), %vm3311_vm0, %v3312_v4  ;;  %v3047_v9 = vpack.c.bf16 (!%p288_p2), %v421_v7, %v420_v6  ;;  %v3394_v10 = vand.u32 (!%p288_p2), 127, %v335_v0  ;;  %v423_v13 = vld [vmem:[%s3951_s1 + $0x28] sm:$0xff] (!%p288_p2)  ;;  %v2402_v23 = vld [vmem:[%s3951_s1 + $0x30] sm:$0xff] (!%p288_p2)  ;;  %v2403_v24 = vld [vmem:[%s3951_s1 + $0x38] sm:$0xff] (!%p288_p2)  ;;  %vm820_vm6 = vcmask (!%p288_p2), 64512  }
   0x8   : > { %3045 = vmatpush3.bf16.msra.mxu1 (!%p288_p2), %v3044_v5  ;;  %v3050_v18 = vpack.c.bf16 (!%p288_p2), %v423_v13, %v422_v12  ;;  %v3056_v25 = vpack.c.bf16 (!%p288_p2), %v2403_v24, %v2402_v23  ;;  %v2404_v26 = vld [vmem:[%s3951_s1 + $0x40] sm:$0xff] (!%p288_p2)  ;;  %v2405_v27 = vld [vmem:[%s3951_s1 + $0x48] sm:$0xff] (!%p288_p2)  ;;  %v2406_v31 = vld [vmem:[%s3951_s1 + $0x50] sm:$0xff] (!%p288_p2)  ;;  %vm1321_vm8 = vcmask (!%p288_p2), 1043456   ;;  %vm1317_vm9 = vcmask (!%p288_p2), 31744  }
   0x9   : > { %v340_v11 = vmul.u32 (!%p288_p2), 2, %v3388_v8  ;;  %3046 = vmatprep.subr.bf16.mxu1 (!%p288_p2), %v3310_v3  ;;  %v3059_v30 = vpack.c.bf16 (!%p288_p2), %v2405_v27, %v2404_v26  ;;  %v2407_v32 = vld [vmem:[%s3951_s1 + $0x58] sm:$0xff] (!%p288_p2)  ;;  %v2410_v36 = vld [vmem:[%s3951_s1 + $0x60] sm:$0xff] (!%p288_p2)  ;;  %v2411_v37 = vld [vmem:[%s3951_s1 + $0x68] sm:$0xff] (!%p288_p2)  ;;  %vm1400_vm10 = vcmask (!%p288_p2), 261120  }
   0xa   : > { %v3062_v35 = vpack.c.bf16 (!%p288_p2), %v2407_v32, %v2406_v31  ;;  %v3068_v40 = vpack.c.bf16 (!%p288_p2), %v2411_v37, %v2410_v36  ;;  %v2412_v41 = vld [vmem:[%s3951_s1 + $0x70] sm:$0xff] (!%p288_p2)  ;;  %v2413_v42 = vld [vmem:[%s3951_s1 + $0x78] sm:$0xff] (!%p288_p2)  ;;  %v2414_v44 = vld [vmem:[%s3951_s1 + $0x80] sm:$0xff] (!%p288_p2) }
   0xb   : > { %v341_v16 = vadd.s32 (!%p288_p2), 4294967295, %v340_v11  ;;  %vm505_vm3 = vcmp.eq.s32.totalorder (!%p288_p2), %v3394_v10, %v340_v11  ;;  %v661_v20 = vadd.s32 (!%p288_p2), 1, %v340_v11  ;;  %v3071_v43 = vpack.c.bf16 (!%p288_p2), %v2413_v42, %v2412_v41  ;;  %v2415_v45 = vld [vmem:[%s3951_s1 + $0x88] sm:$0xff] (!%p288_p2)  ;;  %v2400_v47 = vld [vmem:[%s3955_s5] ss:$0 sm:$0xff] (!%p288_p2)  ;;  %v895_v55 = vld [vmem:[%s3952_s2 + $0x10] sm:$0xff] (!%p288_p2) }
   0xc   : > { %3048 = vmatpush3.bf16.msra.mxu1 (!%p288_p2), %v3047_v9  ;;  %v3422_v21 = vsel (!%p288_p2), %vm505_vm3, 1.0, %v3312_v4  ;;  %v3074_v46 = vpack.c.bf16 (!%p288_p2), %v2415_v45, %v2414_v44  ;;  %v893_v51 = vld [vmem:[%s3952_s2] sm:$0xff] (!%p288_p2)  ;;  %v894_v52 = vld [vmem:[%s3952_s2 + $0x8] sm:$0xff] (!%p288_p2)  ;;  %v896_v56 = vld [vmem:[%s3952_s2 + $0x18] sm:$0xff] (!%p288_p2) }
   0xd   : > { %s3961_s10 = smov (!%p323_p3, %s2389_s10), 1  ;;  %vm342_vm1 = vcmp.eq.s32.totalorder %v3394_v10, %v341_v16  ;;  %3049 = vmatprep.subr.bf16.mxu1 %v3310_v3  ;;  %vm662_vm4 = vcmp.eq.s32.totalorder %v3394_v10, %v661_v20  ;;  %v3077_v54 = vpack.c.bf16 %v894_v52, %v893_v51  ;;  %v3080_v57 = vpack.c.bf16 %v896_v56, %v895_v55  ;;  %v897_v58 = vld [vmem:[%s3952_s2 + $0x20] sm:$0xff]  ;;  %v898_v59 = vld [vmem:[%s3952_s2 + $0x28] sm:$0xff]  ;;  %v899_v61 = vld [vmem:[%s3952_s2 + $0x30] sm:$0xff] }
   0xe   : > { %s2513_s19 = sshll.u32 %s3961_s10, 4  ;;  %v3412_v19 = vsel %vm342_vm1, 1.0, %v3312_v4  ;;  %v3431_v22 = vsel %vm662_vm4, 1.0, %v3312_v4  ;;  %v3083_v60 = vpack.c.bf16 %v898_v59, %v897_v58  ;;  %v900_v62 = vld [vmem:[%s3952_s2 + $0x38] sm:$0xff]  ;;  %v901_v0 = vld [vmem:[%s3952_s2 + $0x40] sm:$0xff]  ;;  %v902_v1 = vld [vmem:[%s3952_s2 + $0x48] sm:$0xff] }
   0xf   : > { %s327_s26 = scalar_lea.vmem %s3950_s0, %s2513_s19  ;;  %v3086_v63 = vpack.c.bf16 %v900_v62, %v899_v61  ;;  %v3089_v2 = vpack.c.bf16 %v902_v1, %v901_v0  ;;  %v903_v5 = vld [vmem:[%s3952_s2 + $0x50] sm:$0xff]  ;;  %v904_v6 = vld [vmem:[%s3952_s2 + $0x58] sm:$0xff]  ;;  %v905_v9 = vld [vmem:[%s3952_s2 + $0x60] sm:$0xff]  ;;  %s332_s25 = scalar_lea.vmem %s3959_s9, %s2513_s19 }
  0x10   : > { %v333_v14 = vld [vmem:[%s327_s26] sm:$0xff]  ;;  %v334_v15 = vld [vmem:[%s327_s26 + $0x8] sm:$0xff]  ;;  %3051 = vmatpush3.bf16.msra.mxu1 %v3050_v18  ;;  %v3092_v7 = vpack.c.bf16 %v904_v6, %v903_v5  ;;  %v907_v13 = vld [vmem:[%s3952_s2 + $0x70] sm:$0xff] }
  0x11   : > { %v3041_v17 = vpack.c.bf16 %v334_v15, %v333_v14  ;;  %3055 = vmatprep.subr.bf16.mxu1 %v3310_v3  ;;  %v906_v11 = vld [vmem:[%s3952_s2 + $0x68] sm:$0xff]  ;;  %v908_v14 = vld [vmem:[%s3952_s2 + $0x78] sm:$0xff]  ;;  %v2420_v16 = vld [vmem:[%s3952_s2 + $0x80] sm:$0xff] }
  0x12   : > { %v3095_v12 = vpack.c.bf16 %v906_v11, %v905_v9  ;;  %v3098_v15 = vpack.c.bf16 %v908_v14, %v907_v13  ;;  %v2423_v20 = vld [vmem:[%s3952_s2 + $0x98] sm:$0xff]  ;;  %v2424_v26 = vld [vmem:[%s3952_s2 + $0xa0] sm:$0xff]  ;;  %v2425_v27 = vld [vmem:[%s3952_s2 + $0xa8] sm:$0xff]  ;;  %v3682_v9 = vmul.u32 2, %v3394_v10 }
  0x13   : > { %3042 = vmatpush3.bf16.msra.mxu0 %v3041_v17  ;;  %v2426_v31 = vld [vmem:[%s3952_s2 + $0xb0] sm:$0xff]  ;;  %v2427_v32 = vld [vmem:[%s3952_s2 + $0xb8] sm:$0xff]  ;;  %v2433_v41 = vld [vmem:[%s3952_s2 + $0xe8] sm:$0xff] }
  0x14   : > { %3052 = vmatprep.subr.bf16.mxu0 %v3310_v3  ;;  %v2430_v37 = vld [vmem:[%s3952_s2 + $0xd0] sm:$0xff]  ;;  %v2435_v44 = vld [vmem:[%s3952_s2 + $0xf8] sm:$0xff]  ;;  %v2441_v52 = vld [vmem:[%s3952_s2 + $0x120] sm:$0xff]  ;;  %vm1308_vm7 = vcmp.eq.s32.totalorder %v3388_v8, %v3682_v9 }
  0x15   : > { %v2443_v55 = vld [vmem:[%s3952_s2 + $0x130] sm:$0xff]  ;;  %v2444_v56 = vld [vmem:[%s3952_s2 + $0x138] sm:$0xff]  ;;  %v2445_v58 = vld [vmem:[%s3952_s2 + $0x140] sm:$0xff] }
  0x16   : > { %2691 = vmatmul.mubr.msk.f32.vlgmr.msra.gmra.mrb[0].mxu0 %vm344_vm2, %v3412_v19  ;;  %v2446_v59 = vld [vmem:[%s3952_s2 + $0x148] sm:$0xff]  ;;  %v2447_v61 = vld [vmem:[%s3952_s2 + $0x150] sm:$0xff]  ;;  %v2448_v62 = vld [vmem:[%s3952_s2 + $0x158] sm:$0xff] }
  0x17   : > { %3054 = vmatpush3.bf16.msra.mxu0 %v3041_v17  ;;  %2712 = vmatprep.mubr.msk.f32.mxu0 %vm3311_vm0, %v3312_v4  ;;  %v2449_v0 = vld [vmem:[%s3952_s2 + $0x160] sm:$0xff]  ;;  %v2450_v1 = vld [vmem:[%s3952_s2 + $0x168] sm:$0xff]  ;;  %v2451_v5 = vld [vmem:[%s3952_s2 + $0x170] sm:$0xff] }
  0x18   : > { %3064 = vmatprep.subr.bf16.mxu0 %v3310_v3  ;;  %v2452_v6 = vld [vmem:[%s3952_s2 + $0x178] sm:$0xff]  ;;  %v2418_v11 = vld [vmem:[%s3956_s6] ss:$0 sm:$0xff]  ;;  %v2457_v14 = vld [vmem:[%s3953_s3 + $0x28] sm:$0xff] }
  0x19   : > { %v2456_v13 = vld [vmem:[%s3953_s3 + $0x20] sm:$0xff] }
  0x1a   : > { %2713 = vmatmul.mubr.msk.f32.vlgmr.msra.gmra.mrb[2].mxu0 %vm344_vm2, %v3422_v21 }
  0x1b   : > { %3066 = vmatpush3.bf16.msra.mxu0 %v3041_v17  ;;  %2734 = vmatprep.mubr.msk.f32.mxu0 %vm3311_vm0, %v3312_v4  ;;  %v2421_v17 = vld [vmem:[%s3952_s2 + $0x88] sm:$0xff] }
  0x1c   : > { %2752 = vmatprep.subr.mxu0 %v3312_v4  ;;  %v3101_v18 = vpack.c.bf16 %v2421_v17, %v2420_v16  ;;  %v3696_v17 = vsel %vm1308_vm7, 1.0, %v3312_v4 }
  0x1e   : > { %2735 = vmatmul.mubr.msk.f32.vlgmr.msra.gmra.mrb[4].mxu0 %vm344_vm2, %v3431_v22 }
  0x1f   : > { %2754 = vmatprep.mubr.msk.f32.mxu0 %vm3311_vm0, %v3312_v4 }
  0xe9   : > { %v414_v28 = vpop.f32.mrb[0].mxu0 }
  0xea   : > { %v2692_v29 = vpop.f32.mrb[1].mxu0  ;;  %2706 = vmatmul.mubr.msk.f32.vlgmr.msra.gmra.mrb[0].mxu1 %vm424_vm5, %v414_v28 }
  0xeb   : > { %3057 = vmatpush3.bf16.msra.mxu1 %v3056_v25  ;;  %2727 = vmatprep.mubr.msk.f32.mxu1 %vm3311_vm0, %v3312_v4  ;;  %v3107_v29 = vpack.c.bf16 %v2425_v27, %v2424_v26 }
  0xec   : > { %3058 = vmatprep.subr.bf16.mxu1 %v3310_v3 }
  0xed   : > { %v576_v33 = vpop.f32.mrb[2].mxu0 }
  0xee   : > { %v2714_v34 = vpop.f32.mrb[3].mxu0 }
  0xef   : > { %3060 = vmatpush3.bf16.msra.mxu1 %v3059_v30  ;;  %v2428_v34 = vld [vmem:[%s3952_s2 + $0xc0] sm:$0xff] }
  0xf0   : > { %3061 = vmatprep.subr.bf16.mxu1 %v3310_v3 }
  0xf1   : > { %v733_v38 = vpop.f32.mrb[4].mxu0 }
  0xf2   : > { %v2736_v39 = vpop.f32.mrb[5].mxu0 }
  0xf3   : > { %3063 = vmatpush3.bf16.msra.mxu1 %v3062_v35  ;;  %v2429_v35 = vld [vmem:[%s3952_s2 + $0xc8] sm:$0xff] }
  0xf4   : > { %3067 = vmatprep.subr.bf16.mxu1 %v3310_v3  ;;  %v3113_v36 = vpack.c.bf16 %v2429_v35, %v2428_v34  ;;  %v2468_v34 = vld [vmem:[%s3953_s3 + $0x48] sm:$0xff] }
  0xf6   : > { %2728 = vmatmul.mubr.msk.f32.vlgmr.msra.gmra.mrb[0].mxu1 %vm424_vm5, %v576_v33  ;;  %v3110_v33 = vpack.c.bf16 %v2427_v32, %v2426_v31  ;;  %v3744_v32 = vadd.s32 4294967295, %v3682_v9 }
  0xf7   : > { %3069 = vmatpush3.bf16.msra.mxu1 %v3068_v40  ;;  %2749 = vmatprep.mubr.msk.f32.mxu1 %vm3311_vm0, %v3312_v4  ;;  %v2432_v40 = vld [vmem:[%s3952_s2 + $0xe0] sm:$0xff] }
  0xf8   : > { %3070 = vmatprep.subr.bf16.mxu1 %v3310_v3  ;;  %v3119_v42 = vpack.c.bf16 %v2433_v41, %v2432_v40  ;;  %vm1314_vm12 = vcmp.eq.s32.totalorder %v3388_v8, %v3744_v32  ;;  %v2470_v40 = vld [vmem:[%s3953_s3 + $0x58] sm:$0xff] }
  0xfb   : > { %3072 = vmatpush3.bf16.msra.mxu1 %v3071_v43  ;;  %v2434_v43 = vld [vmem:[%s3952_s2 + $0xf0] sm:$0xff] }
  0xfc   : > { %3073 = vmatprep.subr.bf16.mxu1 %v3310_v3  ;;  %v3122_v45 = vpack.c.bf16 %v2435_v44, %v2434_v43  ;;  %v2475_v43 = vld [vmem:[%s3954_s4 + $0x88] sm:$0xff]  ;;  %v2476_v44 = vld [vmem:[%s3954_s4 + $0x90] sm:$0xff] }
  0xff   : > { %3075 = vmatpush3.bf16.msra.mxu1 %v3074_v46  ;;  %v2437_v46 = vld [vmem:[%s3952_s2 + $0x100] sm:$0xff] }
 0x100   : > { %2792 = vmatprep.subr.mxu1 %v3312_v4 }
 0x102   : > { %2750 = vmatmul.mubr.msk.f32.vlgmr.msra.gmra.mrb[0].mxu1 %vm424_vm5, %v733_v38  ;;  %v2431_v38 = vld [vmem:[%s3952_s2 + $0xd8] sm:$0xff] }
 0x103   : > { %2794 = vmatprep.mubr.msk.f32.mxu1 %vm3311_vm0, %v3312_v4  ;;  %v3116_v39 = vpack.c.bf16 %v2431_v38, %v2430_v37  ;;  %v3759_v37 = vsel %vm1314_vm12, 1.0, %v3312_v4 }
 0x1d5   : > { %v813_v48 = vpop.f32.mrb[0].mxu1 }
 0x1d6   : > { %v3262_v49 = vadd.f32 %v2400_v47, %v813_v48  ;;  %v2751_v50 = vpop.f32.mrb[1].mxu1  ;;  %v2438_v47 = vld [vmem:[%s3952_s2 + $0x108] sm:$0xff] }
 0x1d7   : > { %v3125_v48 = vpack.c.bf16 %v2438_v47, %v2437_v46  ;;  %v2440_v50 = vld [vmem:[%s3952_s2 + $0x118] sm:$0xff] }
 0x1d8   : > { %v818_v53 = vmax.f32 %v3262_v49, 0.0  ;;  %v2439_v49 = vld [vmem:[%s3952_s2 + $0x110] sm:$0xff]  ;;  %v2477_v46 = vld [vmem:[%s3954_s4 + $0x98] sm:$0xff] }
 0x1d9   : > { %v3128_v51 = vpack.c.bf16 %v2440_v50, %v2439_v49  ;;  %v3170_v47 = vpack.c.bf16 %v2477_v46, %v2476_v44  ;;  %v2480_v50 = vld [vmem:[%s3954_s4 + $0xb0] sm:$0xff] }
 0x1da   : > { %2753 = vmatpush3.msra.mxu0 %v818_v53  ;;  %2793 = vmatpush3.msra.mxu1 %v818_v53  ;;  %v2497_v44 = vld [vmem:[%s3954_s4 + $0x110] sm:$0xff] }
 0x1db   : > { %2755 = vmatmul.mubr.msk.f32.vlgmr.msra.gmra.mrb[6].mxu0 %vm820_vm6, %v3412_v19  ;;  %2832 = vmatprep.subr.mxu1 %v3312_v4  ;;  %v2422_v19 = vld [vmem:[%s3952_s2 + $0x90] sm:$0xff] }
 0x1dc   : > { %2795 = vmatmul.mubr.msk.f32.vlgmr.msra.gmra.mrb[2].mxu1 %vm820_vm6, %v3422_v21  ;;  %3076 = vmatprep.subr.bf16.mxu0 %v3310_v3  ;;  %v3104_v24 = vpack.c.bf16 %v2423_v20, %v2422_v19  ;;  %v2458_v19 = vld [vmem:[%s3953_s3 + $0x30] sm:$0xff]  ;;  %v2459_v20 = vld [vmem:[%s3953_s3 + $0x38] sm:$0xff] }
 0x1dd   : > { %2833 = vmatpush3.msra.mxu1 %v818_v53  ;;  %2834 = vmatprep.mubr.msk.f32.mxu1 %vm3311_vm0, %v3312_v4  ;;  %v2442_v53 = vld [vmem:[%s3952_s2 + $0x128] sm:$0xff] }
 0x1de   : > { %3078 = vmatpush3.bf16.msra.mxu0 %v3077_v54  ;;  %2789 = vmatprep.mubr.msk.f32.mxu0 %vm3311_vm0, %v3312_v4  ;;  %v3131_v54 = vpack.c.bf16 %v2442_v53, %v2441_v52  ;;  %v2482_v53 = vld [vmem:[%s3954_s4 + $0xc0] sm:$0xff] }
 0x1df   : > { %3079 = vmatprep.subr.bf16.mxu0 %v3310_v3  ;;  %2872 = vmatprep.subr.mxu1 %v3312_v4 }
 0x1e0   : > { %2835 = vmatmul.mubr.msk.f32.vlgmr.msra.gmra.mrb[4].mxu1 %vm820_vm6, %v3431_v22 }
 0x1e1   : > { %2874 = vmatprep.mubr.msk.f32.mxu1 %vm3311_vm0, %v3312_v4 }
 0x1e2   : > { %3081 = vmatpush3.bf16.msra.mxu0 %v3080_v57  ;;  %v3134_v57 = vpack.c.bf16 %v2444_v56, %v2443_v55  ;;  %v2484_v56 = vld [vmem:[%s3954_s4 + $0xd0] sm:$0xff] }
 0x1e3   : > { %3082 = vmatprep.subr.bf16.mxu0 %v3310_v3 }
 0x1e6   : > { %3084 = vmatpush3.bf16.msra.mxu0 %v3083_v60  ;;  %v3137_v60 = vpack.c.bf16 %v2446_v59, %v2445_v58  ;;  %v2486_v59 = vld [vmem:[%s3954_s4 + $0xe0] sm:$0xff] }
 0x1e7   : > { %3085 = vmatprep.subr.bf16.mxu0 %v3310_v3 }
 0x1ea   : > { %3087 = vmatpush3.bf16.msra.mxu0 %v3086_v63  ;;  %v3140_v63 = vpack.c.bf16 %v2448_v62, %v2447_v61 }
 0x1eb   : > { %3088 = vmatprep.subr.bf16.mxu0 %v3310_v3 }
 0x1ee   : > { %3090 = vmatpush3.bf16.msra.mxu0 %v3089_v2  ;;  %v3143_v2 = vpack.c.bf16 %v2450_v1, %v2449_v0  ;;  %v2488_v0 = vld [vmem:[%s3954_s4 + $0xf0] sm:$0xff]  ;;  %v2489_v1 = vld [vmem:[%s3954_s4 + $0xf8] sm:$0xff] }
 0x1ef   : > { %3091 = vmatprep.subr.bf16.mxu0 %v3310_v3 }
 0x1f2   : > { %3093 = vmatpush3.bf16.msra.mxu0 %v3092_v7  ;;  %v3146_v7 = vpack.c.bf16 %v2452_v6, %v2451_v5  ;;  %v1785_v5 = vadd.s32 8, %v3388_v8  ;;  %v2461_v6 = vld [vmem:[%s3957_s7] ss:$0 sm:$0xff] }
 0x1f3   : > { %3094 = vmatprep.subr.bf16.mxu0 %v3310_v3 }
 0x1f4   : > { %vm1786_vm13 = vcmp.eq.s32.totalorder %v1785_v5, %v3682_v9  ;;  %vm1790_vm15 = vcmp.eq.s32.totalorder %v1785_v5, %v3744_v32  ;;  %v2495_v32 = vld [vmem:[%s3954_s4 + $0x100] sm:$0xff] }
 0x1f6   : > { %3096 = vmatpush3.bf16.msra.mxu0 %v3095_v12 }
 0x1f7   : > { %3097 = vmatprep.subr.bf16.mxu0 %v3310_v3 }
 0x1fa   : > { %3099 = vmatpush3.bf16.msra.mxu0 %v3098_v15 }
 0x1fb   : > { %3100 = vmatprep.subr.bf16.mxu0 %v3310_v3 }
 0x2ae   : > { %v889_v21 = vpop.f32.mrb[6].mxu0 }
 0x2af   : > { %v2756_v22 = vpop.f32.mrb[7].mxu0  ;;  %2790 = vmatmul.mubr.f32.vlgmr.msra.gmra.mrb[8].mxu0 %v889_v21  ;;  %v1054_v23 = vpop.f32.mrb[2].mxu1  ;;  %v3152_v21 = vpack.c.bf16 %v2459_v20, %v2458_v19  ;;  %v2058_v19 = vld [vmem:[%s3954_s4 + $0x28] sm:$0xff] }
 0x2b0   : > { %3102 = vmatpush3.bf16.msra.mxu0 %v3101_v18  ;;  %v2796_v25 = vpop.f32.mrb[3].mxu1  ;;  %2829 = vmatprep.mubr.msk.f32.mxu0 %vm3311_vm0, %v3312_v4  ;;  %v3149_v18 = vpack.c.bf16 %v2457_v14, %v2456_v13  ;;  %v3713_v22 = vadd.s32 1, %v3682_v9  ;;  %v1787_v14 = vsel %vm1786_vm13, 1.0, %v3312_v4  ;;  %v2055_v9 = vld [vmem:[%s3954_s4 + $0x10] sm:$0xff] }
 0x2b1   : > { %3103 = vmatprep.subr.bf16.mxu0 %v3310_v3 }
 0x2b2   : > { %vm1311_vm11 = vcmp.eq.s32.totalorder %v3388_v8, %v3713_v22  ;;  %v2053_v8 = vld [vmem:[%s3954_s4] sm:$0xff]  ;;  %vm1788_vm14 = vcmp.eq.s32.totalorder %v1785_v5, %v3713_v22  ;;  %v2067_v22 = vld [vmem:[%s3954_s4 + $0x70] sm:$0xff] }
 0x2b3   : > { %v3584_v28 = vpop.f32.mrb[4].mxu1  ;;  %v3728_v27 = vsel %vm1311_vm11, 1.0, %v3312_v4 }
 0x2b4   : > { %3105 = vmatpush3.bf16.msra.mxu0 %v3104_v24  ;;  %v2836_v30 = vpop.f32.mrb[5].mxu1  ;;  %v1555_v24 = vld [vmem:[%s3953_s3 + $0x8] sm:$0xff] }
 0x2b5   : > { %3106 = vmatprep.subr.bf16.mxu0 %v3310_v3  ;;  %v1557_v30 = vld [vmem:[%s3953_s3 + $0x18] sm:$0xff] }
 0x2b8   : > { %3108 = vmatpush3.bf16.msra.mxu0 %v3107_v29  ;;  %v1556_v29 = vld [vmem:[%s3953_s3 + $0x10] sm:$0xff] }
 0x2b9   : > { %3109 = vmatprep.subr.bf16.mxu0 %v3310_v3  ;;  %v3158_v31 = vpack.c.bf16 %v1557_v30, %v1556_v29  ;;  %v2063_v29 = vld [vmem:[%s3954_s4 + $0x50] sm:$0xff]  ;;  %v2064_v30 = vld [vmem:[%s3954_s4 + $0x58] sm:$0xff] }
 0x2bc   : > { %3111 = vmatpush3.bf16.msra.mxu0 %v3110_v33  ;;  %v2467_v33 = vld [vmem:[%s3953_s3 + $0x40] sm:$0xff] }
 0x2bd   : > { %3112 = vmatprep.subr.bf16.mxu0 %v3310_v3  ;;  %v3161_v38 = vpack.c.bf16 %v2468_v34, %v2467_v33  ;;  %v2065_v33 = vld [vmem:[%s3954_s4 + $0x60] sm:$0xff]  ;;  %v2066_v34 = vld [vmem:[%s3954_s4 + $0x68] sm:$0xff] }
 0x2c0   : > { %3114 = vmatpush3.bf16.msra.mxu0 %v3113_v36 }
 0x2c1   : > { %3115 = vmatprep.subr.bf16.mxu0 %v3310_v3 }
 0x2c4   : > { %3117 = vmatpush3.bf16.msra.mxu0 %v3116_v39  ;;  %v2469_v39 = vld [vmem:[%s3953_s3 + $0x50] sm:$0xff] }
 0x2c5   : > { %3118 = vmatprep.subr.bf16.mxu0 %v3310_v3  ;;  %v3164_v41 = vpack.c.bf16 %v2470_v40, %v2469_v39  ;;  %v1789_v39 = vsel %vm1788_vm14, 1.0, %v3312_v4  ;;  %v1791_v40 = vsel %vm1790_vm15, 1.0, %v3312_v4 }
 0x2c8   : > { %3120 = vmatpush3.bf16.msra.mxu0 %v3119_v42  ;;  %v2474_v42 = vld [vmem:[%s3954_s4 + $0x80] sm:$0xff] }
 0x2c9   : > { %3121 = vmatprep.subr.bf16.mxu0 %v3310_v3 }
 0x2cc   : > { %3123 = vmatpush3.bf16.msra.mxu0 %v3122_v45  ;;  %v3166_v45 = vpack.c.bf16 %v2475_v43, %v2474_v42 }
 0x2cd   : > { %3124 = vmatprep.subr.bf16.mxu0 %v3310_v3 }
 0x2cf   : > { %2830 = vmatmul.mubr.f32.vlgmr.msra.gmra.mrb[8].mxu0 %v1054_v23  ;;  %v1554_v23 = vld [vmem:[%s3953_s3] sm:$0xff] }
 0x2d0   : > { %3126 = vmatpush3.bf16.msra.mxu0 %v3125_v48  ;;  %2869 = vmatprep.mubr.msk.f32.mxu0 %vm3311_vm0, %v3312_v4  ;;  %v2479_v48 = vld [vmem:[%s3954_s4 + $0xa8] sm:$0xff] }
 0x2d1   : > { %3127 = vmatprep.subr.bf16.mxu0 %v3310_v3 }
 0x2d4   : > { %3129 = vmatpush3.bf16.msra.mxu0 %v3128_v51  ;;  %v2481_v51 = vld [vmem:[%s3954_s4 + $0xb8] sm:$0xff] }
 0x2d5   : > { %3130 = vmatprep.subr.bf16.mxu0 %v3310_v3  ;;  %v3178_v52 = vpack.c.bf16 %v2481_v51, %v2480_v50 }
 0x2d8   : > { %3132 = vmatpush3.bf16.msra.mxu0 %v3131_v54  ;;  %v2483_v54 = vld [vmem:[%s3954_s4 + $0xc8] sm:$0xff] }
 0x2d9   : > { %3133 = vmatprep.subr.bf16.mxu0 %v3310_v3  ;;  %v3182_v55 = vpack.c.bf16 %v2483_v54, %v2482_v53  ;;  %v2501_v53 = vld [vmem:[%s3954_s4 + $0x130] sm:$0xff]  ;;  %v2502_v54 = vld [vmem:[%s3954_s4 + $0x138] sm:$0xff] }
 0x2dc   : > { %3135 = vmatpush3.bf16.msra.mxu0 %v3134_v57  ;;  %v2485_v57 = vld [vmem:[%s3954_s4 + $0xd8] sm:$0xff] }
 0x2dd   : > { %3136 = vmatprep.subr.bf16.mxu0 %v3310_v3  ;;  %v3186_v58 = vpack.c.bf16 %v2485_v57, %v2484_v56  ;;  %v2503_v56 = vld [vmem:[%s3954_s4 + $0x140] sm:$0xff]  ;;  %v2504_v57 = vld [vmem:[%s3954_s4 + $0x148] sm:$0xff] }
 0x2e0   : > { %3138 = vmatpush3.bf16.msra.mxu0 %v3137_v60  ;;  %v2487_v60 = vld [vmem:[%s3954_s4 + $0xe8] sm:$0xff] }
 0x2e1   : > { %3139 = vmatprep.subr.bf16.mxu0 %v3310_v3  ;;  %v3190_v61 = vpack.c.bf16 %v2487_v60, %v2486_v59  ;;  %v2505_v59 = vld [vmem:[%s3954_s4 + $0x150] sm:$0xff]  ;;  %v2506_v60 = vld [vmem:[%s3954_s4 + $0x158] sm:$0xff] }
 0x2e4   : > { %3141 = vmatpush3.bf16.msra.mxu0 %v3140_v63 }
 0x2e5   : > { %3142 = vmatprep.subr.bf16.mxu0 %v3310_v3 }
 0x2e8   : > { %3144 = vmatpush3.bf16.msra.mxu0 %v3143_v2  ;;  %v3194_v2 = vpack.c.bf16 %v2489_v1, %v2488_v0  ;;  %v2509_v1 = vld [vmem:[%s3954_s4 + $0x170] sm:$0xff] }
 0x2e9   : > { %3145 = vmatprep.subr.bf16.mxu0 %v3310_v3 }
 0x2ec   : > { %3147 = vmatpush3.bf16.msra.mxu0 %v3146_v7 }
 0x2ed   : > { %3167 = vmatprep.subr.bf16.mxu0 %v3166_v45 }
 0x2ef   : > { %2870 = vmatmul.mubr.f32.vlgmr.msra.gmra.mrb[8].mxu0 %v3584_v28  ;;  %v3155_v28 = vpack.c.bf16 %v1555_v24, %v1554_v23  ;;  %v2060_v23 = vld [vmem:[%s3954_s4 + $0x38] sm:$0xff] }
 0x2f0   : > { %3169 = vmatpush3.bf16.msra.mxu0 %v3166_v45  ;;  %v2498_v45 = vld [vmem:[%s3954_s4 + $0x118] sm:$0xff] }
 0x2f1   : > { %3171 = vmatprep.subr.bf16.mxu0 %v3170_v47 }
 0x2f4   : > { %3173 = vmatpush3.bf16.msra.mxu0 %v3170_v47 }
 0x3c2   : > { %v1301_v12 = vpop.f32.mrb[8].mxu0 }
 0x3c3   : > { %v3263_v15 = vadd.f32 %v2418_v11, %v1301_v12  ;;  %v2871_v16 = vpop.f32.mrb[9].mxu0 }
 0x3c5   : > { %v1306_v10 = vmax.f32 %v3263_v15, 0.0  ;;  %v2054_v15 = vld [vmem:[%s3954_s4 + $0x8] sm:$0xff] }
 0x3c6   : > { %v3198_v16 = vpack.c.bf16 %v2054_v15, %v2053_v8 }
 0x3c7   : > { %2873 = vmatpush3.msk.msra.mxu1 %vm1321_vm8, %v1306_v10 }
 0x3c8   : > { %2875 = vmatmul.mubr.msk.f32.vlgmr.msra.gmra.mrb[6].mxu1 %vm1317_vm9, %v3696_v17  ;;  %3148 = vmatprep.subr.bf16.mxu1 %v3310_v3 }
 0x3c9   : > { %3150 = vmatpush3.bf16.msra.mxu1 %v3149_v18  ;;  %2885 = vmatprep.mubr.msk.f32.mxu1 %vm3311_vm0, %v3312_v4  ;;  %v2057_v18 = vld [vmem:[%s3954_s4 + $0x20] sm:$0xff] }
 0x3ca   : > { %3151 = vmatprep.subr.bf16.mxu1 %v3310_v3  ;;  %v3206_v20 = vpack.c.bf16 %v2058_v19, %v2057_v18 }
 0x3cd   : > { %3153 = vmatpush3.bf16.msra.mxu1 %v3152_v21  ;;  %v2059_v21 = vld [vmem:[%s3954_s4 + $0x30] sm:$0xff] }
 0x3ce   : > { %2888 = vmatprep.subr.mxu1 %v3312_v4  ;;  %v3210_v24 = vpack.c.bf16 %v2060_v23, %v2059_v21 }
 0x49b   : > { %v1391_v25 = vpop.f32.mrb[6].mxu1 }
 0x49c   : > { %v2876_v26 = vpop.f32.mrb[7].mxu1  ;;  %2886 = vmatmul.mubr.msk.f32.vlgmr.msra.gmra.mrb[8].mxu1 %vm1400_vm10, %v1391_v25  ;;  %v2061_v25 = vld [vmem:[%s3954_s4 + $0x40] sm:$0xff] }
 0x49d   : > { %2889 = vmatpush3.msk.msra.mxu1 %vm1321_vm8, %v1306_v10  ;;  %2890 = vmatprep.mubr.msk.f32.mxu1 %vm3311_vm0, %v3312_v4  ;;  %v2062_v26 = vld [vmem:[%s3954_s4 + $0x48] sm:$0xff] }
 0x49e   : > { %3154 = vmatprep.subr.bf16.mxu1 %v3310_v3 }
 0x4a0   : > { %2891 = vmatmul.mubr.msk.f32.vlgmr.msra.gmra.mrb[10].mxu1 %vm1317_vm9, %v3728_v27 }
 0x4a1   : > { %3156 = vmatpush3.bf16.msra.mxu1 %v3155_v28  ;;  %2901 = vmatprep.mubr.msk.f32.mxu1 %vm3311_vm0, %v3312_v4  ;;  %v3214_v28 = vpack.c.bf16 %v2062_v26, %v2061_v25 }
 0x4a2   : > { %3157 = vmatprep.subr.bf16.mxu1 %v3310_v3 }
 0x4a5   : > { %3159 = vmatpush3.bf16.msra.mxu1 %v3158_v31  ;;  %v3218_v31 = vpack.c.bf16 %v2064_v30, %v2063_v29 }
 0x4a6   : > { %2904 = vmatprep.subr.mxu1 %v3312_v4 }
 0x573   : > { %v1550_v35 = vpop.f32.mrb[10].mxu1 }
 0x574   : > { %v2892_v36 = vpop.f32.mrb[11].mxu1  ;;  %2902 = vmatmul.mubr.msk.f32.vlgmr.msra.gmra.mrb[8].mxu1 %vm1400_vm10, %v1550_v35  ;;  %v3222_v35 = vpack.c.bf16 %v2066_v34, %v2065_v33 }
 0x575   : > { %2905 = vmatpush3.msk.msra.mxu1 %vm1321_vm8, %v1306_v10  ;;  %2906 = vmatprep.mubr.msk.f32.mxu1 %vm3311_vm0, %v3312_v4  ;;  %v2056_v10 = vld [vmem:[%s3954_s4 + $0x18] sm:$0xff] }
 0x576   : > { %3160 = vmatprep.subr.bf16.mxu1 %v3310_v3 }
 0x578   : > { %2907 = vmatmul.mubr.msk.f32.vlgmr.msra.gmra.mrb[12].mxu1 %vm1317_vm9, %v3759_v37 }
 0x579   : > { %3162 = vmatpush3.bf16.msra.mxu1 %v3161_v38  ;;  %2917 = vmatprep.mubr.msk.f32.mxu1 %vm3311_vm0, %v3312_v4  ;;  %v2496_v4 = vld [vmem:[%s3954_s4 + $0x108] sm:$0xff] }
 0x57a   : > { %3163 = vmatprep.subr.bf16.mxu1 %v3310_v3  ;;  %v2478_v3 = vld [vmem:[%s3954_s4 + $0xa0] sm:$0xff] }
 0x57b   : > { %v3174_v49 = vpack.c.bf16 %v2479_v48, %v2478_v3  ;;  %v3234_v3 = vpack.c.bf16 %v2498_v45, %v2497_v44  ;;  %v2499_v48 = vld [vmem:[%s3954_s4 + $0x120] sm:$0xff] }
 0x57d   : > { %3165 = vmatpush3.bf16.msra.mxu1 %v3164_v41  ;;  %3175 = vmatprep.subr.bf16.mxu0 %v3174_v49 }
 0x57e   : > { %3177 = vmatpush3.bf16.msra.mxu0 %v3174_v49  ;;  %v2500_v49 = vld [vmem:[%s3954_s4 + $0x128] sm:$0xff] }
 0x57f   : > { %3179 = vmatprep.subr.bf16.mxu0 %v3178_v52  ;;  %v3238_v51 = vpack.c.bf16 %v2500_v49, %v2499_v48 }
 0x582   : > { %3181 = vmatpush3.bf16.msra.mxu0 %v3178_v52 }
 0x583   : > { %3183 = vmatprep.subr.bf16.mxu0 %v3182_v55 }
 0x586   : > { %3185 = vmatpush3.bf16.msra.mxu0 %v3182_v55  ;;  %v3242_v55 = vpack.c.bf16 %v2502_v54, %v2501_v53 }
 0x587   : > { %3187 = vmatprep.subr.bf16.mxu0 %v3186_v58 }
 0x58a   : > { %3189 = vmatpush3.bf16.msra.mxu0 %v3186_v58  ;;  %v3246_v58 = vpack.c.bf16 %v2504_v57, %v2503_v56 }
 0x58b   : > { %3191 = vmatprep.subr.bf16.mxu0 %v3190_v61 }
 0x58e   : > { %3193 = vmatpush3.bf16.msra.mxu0 %v3190_v61  ;;  %v3250_v61 = vpack.c.bf16 %v2506_v60, %v2505_v59 }
 0x58f   : > { %3195 = vmatprep.subr.bf16.mxu0 %v3194_v2 }
 0x592   : > { %3197 = vmatpush3.bf16.msra.mxu0 %v3194_v2  ;;  %v2510_v2 = vld [vmem:[%s3954_s4 + $0x178] sm:$0xff] }
 0x593   : > { %v3258_v5 = vpack.c.bf16 %v2510_v2, %v2509_v1 }
 0x64b   : > { %v1701_v62 = vpop.f32.mrb[12].mxu1 }
 0x64c   : > { %v2908_v63 = vpop.f32.mrb[13].mxu1  ;;  %2918 = vmatmul.mubr.msk.f32.vlgmr.msra.gmra.mrb[8].mxu1 %vm1400_vm10, %v1701_v62  ;;  %v2507_v62 = vld [vmem:[%s3954_s4 + $0x160] sm:$0xff] }
 0x64d   : > { %2922 = vmatprep.mubr.msk.f32.mxu1 %vm820_vm6, %v3696_v17  ;;  %v3202_v17 = vpack.c.bf16 %v2056_v10, %v2055_v9  ;;  %v2508_v63 = vld [vmem:[%s3954_s4 + $0x168] sm:$0xff] }
 0x64e   : > { %v3254_v0 = vpack.c.bf16 %v2508_v63, %v2507_v62 }
 0x71f   : > { %v1779_v7 = vpop.f32.mrb[8].mxu1 }
 0x720   : > { %v3264_v11 = vadd.f32 %v2461_v6, %v1779_v7  ;;  %v2919_v12 = vpop.f32.mrb[9].mxu1  ;;  %v2490_v6 = vld [vmem:[%s3958_s8] ss:$0 sm:$0xff] }
 0x722   : > { %v1784_v13 = vmax.f32 %v3264_v11, 0.0 }
 0x724   : > { %2920 = vmatprep.subr.mxu1 %v1784_v13  ;;  %2960 = vmatprep.subr.mxu0 %v1784_v13 }
 0x725   : > { %2921 = vmatpush3.msra.mxu1 %v1784_v13 }
 0x726   : > { %2923 = vmatmul.mubr.msk.f32.vlgmr.msra.gmra.mrb[14].mxu1 %vm820_vm6, %v1787_v14  ;;  %3199 = vmatprep.subr.bf16.mxu1 %v3198_v16 }
 0x727   : > { %3201 = vmatpush3.bf16.msra.mxu1 %v3198_v16 }
 0x728   : > { %3203 = vmatprep.subr.bf16.mxu1 %v3202_v17 }
 0x72b   : > { %3205 = vmatpush3.bf16.msra.mxu1 %v3202_v17 }
 0x72c   : > { %3207 = vmatprep.subr.bf16.mxu1 %v3206_v20 }
 0x72f   : > { %3209 = vmatpush3.bf16.msra.mxu1 %v3206_v20 }
 0x730   : > { %3211 = vmatprep.subr.bf16.mxu1 %v3210_v24 }
 0x733   : > { %3213 = vmatpush3.bf16.msra.mxu1 %v3210_v24 }
 0x734   : > { %3215 = vmatprep.subr.bf16.mxu1 %v3214_v28 }
 0x737   : > { %3217 = vmatpush3.bf16.msra.mxu1 %v3214_v28 }
 0x738   : > { %3219 = vmatprep.subr.bf16.mxu1 %v3218_v31 }
 0x73b   : > { %3221 = vmatpush3.bf16.msra.mxu1 %v3218_v31 }
 0x73c   : > { %3223 = vmatprep.subr.bf16.mxu1 %v3222_v35 }
 0x73f   : > { %3225 = vmatpush3.bf16.msra.mxu1 %v3222_v35 }
 0x7f9   : > { %v2924_v36 = vpop.f32.mrb[14].mxu1 }
 0x7fa   : > { %v1864_v38 = vpop.f32.mrb[15].mxu1 }
 0x7fb   : > { %2957 = vmatprep.mubr.f32.mxu0 %v1864_v38 }
 0x7fc   : > { %2958 = vmatmul.mubr.f32.vlgmr.msra.gmra.mrb[10].mxu0 %v2924_v36 }
 0x7fd   : > { %2961 = vmatpush3.msra.mxu0 %v1784_v13  ;;  %2962 = vmatprep.mubr.msk.f32.mxu0 %vm820_vm6, %v3728_v27  ;;  %v2068_v27 = vld [vmem:[%s3954_s4 + $0x78] sm:$0xff] }
 0x7fe   : > { %3000 = vmatprep.subr.mxu0 %v1784_v13  ;;  %v3226_v41 = vpack.c.bf16 %v2068_v27, %v2067_v22 }
 0x800   : > { %2963 = vmatmul.mubr.msk.f32.vlgmr.msra.gmra.mrb[12].mxu0 %vm820_vm6, %v1789_v39  ;;  %3227 = vmatprep.subr.bf16.mxu1 %v3226_v41 }
 0x801   : > { %3001 = vmatpush3.msra.mxu0 %v1784_v13  ;;  %3002 = vmatprep.mubr.msk.f32.mxu0 %vm820_vm6, %v3759_v37  ;;  %v3230_v37 = vpack.c.bf16 %v2496_v4, %v2495_v32 }
 0x802   : > { %3229 = vmatpush3.bf16.msra.mxu1 %v3226_v41 }
 0x803   : > { %3231 = vmatprep.subr.bf16.mxu1 %v3230_v37 }
 0x804   : > { %3003 = vmatmul.mubr.msk.f32.vlgmr.msra.gmra.mrb[14].mxu0 %vm820_vm6, %v1791_v40 }
 0x8cf   : > { %v2959_v42 = vpop.f32.mrb[10].mxu0 }
 0x8d0   : > { %v1956_v43 = vpop.f32.mrb[11].mxu0  ;;  %v1972_v7 = vadd.f32 %v2959_v42, %v2490_v6 }
 0x8d1   : > { %v1971_v11 = vadd.f32 %v2490_v6, %v1956_v43 }
 0x8d3   : > { %v2964_v46 = vpop.f32.mrb[12].mxu0 }
 0x8d4   : > { %v2044_v47 = vpop.f32.mrb[13].mxu0 }
 0x8d5   : > { %2997 = vmatprep.mubr.f32.mxu1 %v2044_v47 }
 0x8d6   : > { %2998 = vmatmul.mubr.f32.vlgmr.msra.gmra.mrb[16].mxu1 %v2964_v46 }
 0x8d7   : > { %3233 = vmatpush3.bf16.msra.mxu1 %v3230_v37  ;;  %v3004_v50 = vpop.f32.mrb[14].mxu0 }
 0x8d8   : > { %3235 = vmatprep.subr.bf16.mxu1 %v3234_v3  ;;  %v2217_v52 = vpop.f32.mrb[15].mxu0 }
 0x8d9   : > { %3037 = vmatprep.mubr.f32.mxu1 %v2217_v52 }
 0x8db   : > { %3237 = vmatpush3.bf16.msra.mxu1 %v3234_v3 }
 0x8dc   : > { %3239 = vmatprep.subr.bf16.mxu1 %v3238_v51 }
 0x8df   : > { %3241 = vmatpush3.bf16.msra.mxu1 %v3238_v51 }
 0x8e0   : > { %3243 = vmatprep.subr.bf16.mxu1 %v3242_v55 }
 0x8e3   : > { %3245 = vmatpush3.bf16.msra.mxu1 %v3242_v55 }
 0x8e4   : > { %3247 = vmatprep.subr.bf16.mxu1 %v3246_v58 }
 0x8e7   : > { %3249 = vmatpush3.bf16.msra.mxu1 %v3246_v58 }
 0x8e8   : > { %3251 = vmatprep.subr.bf16.mxu1 %v3250_v61 }
 0x8eb   : > { %3253 = vmatpush3.bf16.msra.mxu1 %v3250_v61 }
 0x8ec   : > { %3255 = vmatprep.subr.bf16.mxu1 %v3254_v0 }
 0x8ef   : > { %3257 = vmatpush3.bf16.msra.mxu1 %v3254_v0 }
 0x8f0   : > { %3259 = vmatprep.subr.bf16.mxu1 %v3258_v5 }
 0x8f3   : > { %3261 = vmatpush3.bf16.msra.mxu1 %v3258_v5 }
 0x8f6   : > { %3038 = vmatmul.mubr.f32.vlgmr.msra.gmra.mrb[16].mxu1 %v3004_v50 }
 0x9c9   : > { %v3039_v12 = vpop.f32.mrb[16].mxu1 }
 0x9ca   : > { %v3266_v13 = vadd.f32 %v3039_v12, %v1972_v7  ;;  %v2309_v14 = vpop.f32.mrb[17].mxu1 }
 0x9cb   : > { %v3268_v8 = vadd.f32 %v2309_v14, %v1971_v11 }
 0x9cc   : > { %v2321_v15 = vsub.f32 0.0, %v3266_v13 }
 0x9cd   : > { %v2320_v9 = vsub.f32 0.0, %v3268_v8 }
 0x9ce   : > { %v2324_v16 = vmul.f32 1.442695, %v2321_v15 }
 0x9cf   : > { %v2322_v10 = vmul.f32 1.442695, %v2320_v9 }
 0x9d0   : > { %3294 = vpow2.f32 %v2324_v16 }
 0x9d1   : > { %3296 = vpow2.f32 %v2322_v10 }
 0x9da   : > { %v3295_v17 = vpop.eup %3294 }
 0x9db   : > { %v3297_v18 = vpop.eup %3296  ;;  %v2327_v19 = vadd.f32 1.0, %v3295_v17 }
 0x9dc   : > { %v2326_v20 = vadd.f32 1.0, %v3297_v18 }
 0x9dd   : > { %3298 = vrcp.f32 %v2327_v19 }
 0x9de   : > { %3300 = vrcp.f32 %v2326_v20 }
 0x9e7   : > { %v3299_v21 = vpop.eup %3298 }
 0x9e8   : > { %v3301_v23 = vpop.eup %3300  ;;  %2333 = vst.msk [vmem:[%s332_s25 + $0x8] sm:$0xff] %vm424_vm5, %v3299_v21 }
 0x9e9   : > { %2332 = vst.msk [vmem:[%s332_s25] sm:$0xff] %vm424_vm5, %v3301_v23 }
 0x9ea PF: > { %s19_s30 = sadd.s32 1, %s3308_s30  }
 0x9eb   : > { %p16_p4 = scmp.ge.s32.totalorder %s19_s30, 4  }
 0x9ed   :  { %18 = sbr.rel (!%p16_p4) target bundleno = 1 (0x1), region = 94 }

</bundles_post_ra>
